<compile_context>
chip_gen: v7x
topology: tpu7x:2x2x1
jax: 0.10.0
libtpu: 0.0.40
codegen_flags: <defaults>
</compile_context>

<pallas_src>
from functools import partial

import jax
import jax.numpy as jnp
from jax.experimental import pallas as pl
from jax.experimental.pallas import tpu as pltpu

# Large finite negative for masking: avoids exp(-inf - (-inf)) = NaN on rows whose
# current KV tile is fully masked.
NEG_INF = -1e30


def transformer_layer_kernel(
    # inputs
    xq_ref, xkv_ref,
    wq_ref, bq_ref, wkv_ref, bkv_ref, wo_ref, bo_ref,
    g1_ref, be1_ref,
    wh_ref, bh_ref, wout_ref, bout_ref,
    g2_ref, be2_ref,
    # outputs
    o_ref,
    # scratch
    q_sc, k_sc, v_sc, m_sc, l_sc, acc_sc, slab_sc,
    *, num_heads, tq, tk, compute_dtype,
):
    qi = pl.program_id(1)
    ki = pl.program_id(2)
    n_kv = pl.num_programs(2)

    H = num_heads
    D = xq_ref.shape[-1]
    hd = D // H
    scale = 1.0 / float(hd) ** 0.5
    cd = compute_dtype

    q_start = qi * tq
    k_start = ki * tk

    # ---- per (batch, q-tile) init: project Q once, reset online-softmax state ----
    @pl.when(ki == 0)
    def _init():
        xq = xq_ref[0].astype(cd)                                      # [tq, D]
        q = jnp.dot(xq, wq_ref[...].astype(cd),
                    preferred_element_type=jnp.float32) + bq_ref[...]  # [tq, D]
        for h in range(H):      # head-major scatter (lane-aligned when hd % 128 == 0)
            q_sc[h] = q[:, h * hd:(h + 1) * hd]
        m_sc[...] = jnp.full_like(m_sc, NEG_INF)
        l_sc[...] = jnp.zeros_like(l_sc)
        acc_sc[...] = jnp.zeros_like(acc_sc)

    # ---- online-softmax accumulation over this KV tile ----------------------------
    # Skip KV tiles that lie entirely above the causal diagonal for this query tile.
    @pl.when(k_start <= q_start + tq - 1)
    def _attend():
        xkv = xkv_ref[0].astype(cd)                                    # [tk, D]
        # fused K|V projection (wk|wv concatenated on the host)
        kvp = jnp.dot(xkv, wkv_ref[...].astype(cd),
                      preferred_element_type=jnp.float32) + bkv_ref[...]  # [tk, 2D]
        for h in range(H):
            k_sc[h] = kvp[:, h * hd:(h + 1) * hd]
            v_sc[h] = kvp[:, D + h * hd:D + (h + 1) * hd]

        q3 = q_sc[...].astype(cd)                                      # [H, tq, hd]
        k3 = k_sc[...].astype(cd)                                      # [H, tk, hd]
        v3 = v_sc[...].astype(cd)                                      # [H, tk, hd]

        s = jnp.einsum("hqd,hkd->hqk", q3, k3,
                       preferred_element_type=jnp.float32) * scale     # [H, tq, tk]

        # in-kernel causal mask (no [L,L] HBM mask input)
        rows = q_start + jax.lax.broadcasted_iota(jnp.int32, (H, tq, tk), 1)
        cols = k_start + jax.lax.broadcasted_iota(jnp.int32, (H, tq, tk), 2)
        s = jnp.where(cols > rows, NEG_INF, s)

        m_prev = m_sc[...]                                             # [H, tq, 1]
        m_new = jnp.maximum(m_prev, jnp.max(s, axis=-1, keepdims=True))
        alpha = jnp.exp(m_prev - m_new)
        p = jnp.exp(s - m_new)                                         # [H, tq, tk]
        l_sc[...] = alpha * l_sc[...] + jnp.sum(p, axis=-1, keepdims=True)
        acc_sc[...] = alpha * acc_sc[...] + jnp.einsum(
            "hqk,hkd->hqd", p.astype(cd), v3,
            preferred_element_type=jnp.float32)                        # [H, tq, hd]
        m_sc[...] = m_new

    # ---- finalize: out-proj + residual/LN1 + FFN + residual/LN2 -------------------
    @pl.when(ki == n_kv - 1)
    def _finalize():
        # normalize with the EUP approximate reciprocal and write each head into its
        # lane offset of a [tq, D] slab (replaces head_outs + concatenate)
        for h in range(H):
            inv_l = pl.reciprocal(l_sc[h], approx=True)                # [tq, 1]
            slab_sc[:, h * hd:(h + 1) * hd] = acc_sc[h] * inv_l
        attn_cat = slab_sc[...]                                        # [tq, D]

        attn = jnp.dot(attn_cat.astype(cd), wo_ref[...].astype(cd),
                       preferred_element_type=jnp.float32) + bo_ref[...]

        # TODO(synk): dropout (p=0.1) is omitted; kernel implements eval-mode forward.
        xq = xq_ref[0].astype(jnp.float32)
        r1 = xq + attn
        mu1 = jnp.mean(r1, axis=-1, keepdims=True)
        var1 = jnp.mean((r1 - mu1) ** 2, axis=-1, keepdims=True)
        y1 = (r1 - mu1) * jax.lax.rsqrt(var1 + 1e-5) * g1_ref[...] + be1_ref[...]

        h1 = jnp.dot(y1.astype(cd), wh_ref[...].astype(cd),
                     preferred_element_type=jnp.float32) + bh_ref[...]
        h1 = jnp.maximum(h1, 0.0)
        f = jnp.dot(h1.astype(cd), wout_ref[...].astype(cd),
                    preferred_element_type=jnp.float32) + bout_ref[...]

        r2 = y1 + f
        mu2 = jnp.mean(r2, axis=-1, keepdims=True)
        var2 = jnp.mean((r2 - mu2) ** 2, axis=-1, keepdims=True)
        y2 = (r2 - mu2) * jax.lax.rsqrt(var2 + 1e-5) * g2_ref[...] + be2_ref[...]

        o_ref[0] = y2.astype(o_ref.dtype)


def transformer_layer(x, params, *, num_heads, tq=None, tk=None,
                      compute_dtype=jnp.float32):
    """Fused causal TransformerLayer forward (eval mode).

    x: [B, L, D] activations (D on the lane axis).
    All Linear weights are stored as [in, out] so the kernel computes y = x @ W + b.
    compute_dtype: dtype fed to the MXU (use jnp.bfloat16 on v6e/v7x); accumulation,
    softmax statistics and LayerNorm stay in f32.
    """
    B, L, D = x.shape
    HID = params["wh"].shape[1]
    H = num_heads
    assert D % H == 0
    hd = D // H

    tq = min(tq or 128, L)
    tk = min(tk or 128, L)
    assert L % tq == 0 and L % tk == 0
    n_q, n_kv = L // tq, L // tk

    cd = compute_dtype
    wq = params["wq"].astype(cd)
    wkv = jnp.concatenate([params["wk"], params["wv"]], axis=1).astype(cd)   # [D, 2D]
    bkv = jnp.concatenate([params["bk"], params["bv"]], axis=1)              # [1, 2D]
    wo = params["wo"].astype(cd)
    wh = params["wh"].astype(cd)
    wout = params["wout"].astype(cd)

    def w_spec(shape):
        zeros = (0,) * len(shape)
        return pl.BlockSpec(shape, lambda b, qi, ki, _z=zeros: _z)

    in_specs = [
        pl.BlockSpec((1, tq, D), lambda b, qi, ki: (b, qi, 0)),   # x (query tile)
        pl.BlockSpec((1, tk, D), lambda b, qi, ki: (b, ki, 0)),   # x (kv tile)
        w_spec((D, D)), w_spec((1, D)),            # wq, bq
        w_spec((D, 2 * D)), w_spec((1, 2 * D)),    # wkv, bkv (fused K|V)
        w_spec((D, D)), w_spec((1, D)),            # wo, bo
        w_spec((1, D)), w_spec((1, D)),            # norm1 gamma, beta
        w_spec((D, HID)), w_spec((1, HID)),        # ffn hidden
        w_spec((HID, D)), w_spec((1, D)),          # ffn output
        w_spec((1, D)), w_spec((1, D)),            # norm2 gamma, beta
    ]
    out_spec = pl.BlockSpec((1, tq, D), lambda b, qi, ki: (b, qi, 0))

    # Advisory cost estimate for XLA's scheduler.
    flops = B * (2 * L * D * (4 * D + 2 * HID) + 4 * L * L * D)
    transcendentals = B * H * L * L
    w_itemsize = int(jnp.dtype(cd).itemsize)
    bytes_accessed = int(
        x.dtype.itemsize * 3 * B * L * D
        + w_itemsize * (4 * D * D + 2 * D * HID)
        + 4 * (9 * D + HID)
    )

    kernel = partial(transformer_layer_kernel, num_heads=H, tq=tq, tk=tk,
                     compute_dtype=cd)
    return pl.pallas_call(
        kernel,
        out_shape=jax.ShapeDtypeStruct((B, L, D), x.dtype),
        grid=(B, n_q, n_kv),
        in_specs=in_specs,
        out_specs=out_spec,
        scratch_shapes=[
            pltpu.VMEM((H, tq, hd), jnp.float32),   # Q (head-major)
            pltpu.VMEM((H, tk, hd), jnp.float32),   # K tile (head-major)
            pltpu.VMEM((H, tk, hd), jnp.float32),   # V tile (head-major)
            pltpu.VMEM((H, tq, 1), jnp.float32),    # running max m
            pltpu.VMEM((H, tq, 1), jnp.float32),    # running sum l
            pltpu.VMEM((H, tq, hd), jnp.float32),   # attention accumulator
            pltpu.VMEM((tq, D), jnp.float32),       # concatenated-heads slab
        ],
        compiler_params=pltpu.CompilerParams(
            dimension_semantics=("parallel", "parallel", "arbitrary"),
            vmem_limit_bytes=32 * 1024 * 1024,
        ),
        cost_estimate=pl.CostEstimate(
            flops=flops,
            transcendentals=transcendentals,
            bytes_accessed=bytes_accessed,
        ),
    )(x, x, wq, params["bq"], wkv, bkv, wo, params["bo"],
      params["g1"], params["be1"], wh, params["bh"], wout, params["bout"],
      params["g2"], params["be2"])


def reference(x, params, num_heads):
    """Pure-JAX reference mirroring the PyTorch forward (eval mode, causal mask)."""
    B, L, D = x.shape
    hd = D // num_heads
    scale = 1.0 / (hd ** 0.5)

    row = jnp.arange(L)[:, None]
    col = jnp.arange(L)[None, :]
    mask = jnp.where(col > row, -jnp.inf, 0.0).astype(jnp.float32)

    def ln(z, g, b):
        mu = jnp.mean(z, axis=-1, keepdims=True)
        var = jnp.mean((z - mu) ** 2, axis=-1, keepdims=True)
        return (z - mu) * jax.lax.rsqrt(var + 1e-5) * g + b

    q = x @ params["wq"] + params["bq"]
    k = x @ params["wk"] + params["bk"]
    v = x @ params["wv"] + params["bv"]
    qh = q.reshape(B, L, num_heads, hd).transpose(0, 2, 1, 3)
    kh = k.reshape(B, L, num_heads, hd).transpose(0, 2, 1, 3)
    vh = v.reshape(B, L, num_heads, hd).transpose(0, 2, 1, 3)
    s = jnp.einsum("bhqd,bhkd->bhqk", qh, kh) * scale + mask[None, None]
    p = jax.nn.softmax(s, axis=-1)
    attn = jnp.einsum("bhqk,bhkd->bhqd", p, vh).transpose(0, 2, 1, 3).reshape(B, L, D)
    attn = attn @ params["wo"] + params["bo"]
    y1 = ln(x + attn, params["g1"], params["be1"])
    f = jnp.maximum(y1 @ params["wh"] + params["bh"], 0.0) @ params["wout"] + params["bout"]
    return ln(y1 + f, params["g2"], params["be2"])


if __name__ == "__main__":
    # Small deterministic shapes; tq/tk < L so the flash tiling, the causal-tile
    # skip and the online softmax are actually exercised (grid = (2, 2, 2)).
    B, L, D, H, HID = 2, 16, 32, 4, 64
    TQ = TK = 8
    std = 0.02

    key = jax.random.PRNGKey(0)
    keys = jax.random.split(key, 10)

    x = jax.random.normal(keys[0], (B, L, D), jnp.float32)

    params = {
        # attention projections (weights stored as [in, out])
        "wq": std * jax.random.normal(keys[1], (D, D), jnp.float32),
        "bq": jnp.zeros((1, D), jnp.float32),
        "wk": std * jax.random.normal(keys[2], (D, D), jnp.float32),
        "bk": jnp.zeros((1, D), jnp.float32),
        "wv": std * jax.random.normal(keys[3], (D, D), jnp.float32),
        "bv": jnp.zeros((1, D), jnp.float32),
        "wo": std * jax.random.normal(keys[4], (D, D), jnp.float32),
        "bo": jnp.zeros((1, D), jnp.float32),
        # sublayer-1 LayerNorm: weight ~ N(1, 0.02), bias = 0
        "g1": 1.0 + std * jax.random.normal(keys[5], (1, D), jnp.float32),
        "be1": jnp.zeros((1, D), jnp.float32),
        # FFN: hidden / output linears, weight ~ N(0, 0.02), bias = 0
        "wh": std * jax.random.normal(keys[6], (D, HID), jnp.float32),
        "bh": jnp.zeros((1, HID), jnp.float32),
        "wout": std * jax.random.normal(keys[7], (HID, D), jnp.float32),
        "bout": jnp.zeros((1, D), jnp.float32),
        # sublayer-2 LayerNorm
        "g2": 1.0 + std * jax.random.normal(keys[8], (1, D), jnp.float32),
        "be2": jnp.zeros((1, D), jnp.float32),
    }

    out = transformer_layer(x, params, num_heads=H, tq=TQ, tk=TK,
                            compute_dtype=jnp.float32)
    out = jax.block_until_ready(out)

    ref = reference(x, params, H)
    assert out.shape == (B, L, D)
    # pl.reciprocal(approx=True) + online-softmax reordering introduce small
    # deviations vs the monolithic f32 reference; compare with a slightly
    # relaxed (still tight) tolerance.
    assert jnp.allclose(out, ref, atol=1e-3, rtol=1e-3), \
        "Pallas output mismatch vs reference"

    print("KERNEL_OK")
</pallas_src>

<mosaic_0001>
module attributes {stable_mosaic.version = 11 : i64} {
  func.func @transformer_layer_kernel(%arg0: i32, %arg1: i32, %arg2: i32, %arg3: memref<1x8x32xf32, #tpu.memory_space<vmem>>, %arg4: memref<1x8x32xf32, #tpu.memory_space<vmem>>, %arg5: memref<32x32xf32, #tpu.memory_space<vmem>>, %arg6: memref<1x32xf32, #tpu.memory_space<vmem>>, %arg7: memref<32x64xf32, #tpu.memory_space<vmem>>, %arg8: memref<1x64xf32, #tpu.memory_space<vmem>>, %arg9: memref<32x32xf32, #tpu.memory_space<vmem>>, %arg10: memref<1x32xf32, #tpu.memory_space<vmem>>, %arg11: memref<1x32xf32, #tpu.memory_space<vmem>>, %arg12: memref<1x32xf32, #tpu.memory_space<vmem>>, %arg13: memref<32x64xf32, #tpu.memory_space<vmem>>, %arg14: memref<1x64xf32, #tpu.memory_space<vmem>>, %arg15: memref<64x32xf32, #tpu.memory_space<vmem>>, %arg16: memref<1x32xf32, #tpu.memory_space<vmem>>, %arg17: memref<1x32xf32, #tpu.memory_space<vmem>>, %arg18: memref<1x32xf32, #tpu.memory_space<vmem>>, %arg19: memref<1x8x32xf32, #tpu.memory_space<vmem>>, %arg20: memref<4x8x8xf32, #tpu.memory_space<vmem>>, %arg21: memref<4x8x8xf32, #tpu.memory_space<vmem>>, %arg22: memref<4x8x8xf32, #tpu.memory_space<vmem>>, %arg23: memref<4x8x1xf32, #tpu.memory_space<vmem>>, %arg24: memref<4x8x1xf32, #tpu.memory_space<vmem>>, %arg25: memref<4x8x8xf32, #tpu.memory_space<vmem>>, %arg26: memref<8x32xf32, #tpu.memory_space<vmem>>) attributes {dimension_semantics = [#tpu.dimension_semantics<parallel>, #tpu.dimension_semantics<parallel>, #tpu.dimension_semantics<arbitrary>], iteration_bounds = array<i64: 2, 2, 2>, scalar_prefetch = 0 : i64, scratch_operands = 7 : i64, tpu.core_type = #tpu.core_type<tc>, window_params = [{transform_indices = @transform_0, window_bounds = array<i64: 1, 8, 32>}, {transform_indices = @transform_1, window_bounds = array<i64: 1, 8, 32>}, {pipeline_mode = #tpu.pipeline_mode<synchronous>, transform_indices = @transform_2, window_bounds = array<i64: 32, 32>}, {pipeline_mode = #tpu.pipeline_mode<synchronous>, transform_indices = @transform_3, window_bounds = array<i64: 1, 32>}, {pipeline_mode = #tpu.pipeline_mode<synchronous>, transform_indices = @transform_4, window_bounds = array<i64: 32, 64>}, {pipeline_mode = #tpu.pipeline_mode<synchronous>, transform_indices = @transform_5, window_bounds = array<i64: 1, 64>}, {pipeline_mode = #tpu.pipeline_mode<synchronous>, transform_indices = @transform_6, window_bounds = array<i64: 32, 32>}, {pipeline_mode = #tpu.pipeline_mode<synchronous>, transform_indices = @transform_7, window_bounds = array<i64: 1, 32>}, {pipeline_mode = #tpu.pipeline_mode<synchronous>, transform_indices = @transform_8, window_bounds = array<i64: 1, 32>}, {pipeline_mode = #tpu.pipeline_mode<synchronous>, transform_indices = @transform_9, window_bounds = array<i64: 1, 32>}, {pipeline_mode = #tpu.pipeline_mode<synchronous>, transform_indices = @transform_10, window_bounds = array<i64: 32, 64>}, {pipeline_mode = #tpu.pipeline_mode<synchronous>, transform_indices = @transform_11, window_bounds = array<i64: 1, 64>}, {pipeline_mode = #tpu.pipeline_mode<synchronous>, transform_indices = @transform_12, window_bounds = array<i64: 64, 32>}, {pipeline_mode = #tpu.pipeline_mode<synchronous>, transform_indices = @transform_13, window_bounds = array<i64: 1, 32>}, {pipeline_mode = #tpu.pipeline_mode<synchronous>, transform_indices = @transform_14, window_bounds = array<i64: 1, 32>}, {pipeline_mode = #tpu.pipeline_mode<synchronous>, transform_indices = @transform_15, window_bounds = array<i64: 1, 32>}, {transform_indices = @transform_16, window_bounds = array<i64: 1, 8, 32>}]} {
    %c8_i32 = arith.constant 8 : i32
    %0 = arith.muli %arg1, %c8_i32 : i32
    %c8_i32_0 = arith.constant 8 : i32
    %1 = arith.muli %arg2, %c8_i32_0 : i32
    %c0_i32 = arith.constant 0 : i32
    %2 = arith.cmpi eq, %arg2, %c0_i32 : i32
    %3 = arith.extui %2 : i1 to i32
    %c0_i32_1 = arith.constant 0 : i32
    %4 = arith.cmpi ne, %3, %c0_i32_1 : i32
    scf.if %4 {
      %c0 = arith.constant 0 : index
      %c0_6 = arith.constant 0 : index
      %c0_7 = arith.constant 0 : index
      %13 = vector.load %arg3[%c0, %c0_6, %c0_7] : memref<1x8x32xf32, #tpu.memory_space<vmem>>, vector<1x8x32xf32>
      %14 = vector.shape_cast %13 : vector<1x8x32xf32> to vector<8x32xf32>
      %c0_8 = arith.constant 0 : index
      %c0_9 = arith.constant 0 : index
      %15 = vector.load %arg5[%c0_8, %c0_9] : memref<32x32xf32, #tpu.memory_space<vmem>>, vector<32x32xf32>
      %cst = arith.constant dense<0.000000e+00> : vector<8x32xf32>
      %16 = tpu.matmul %14, %15, %cst {dimension_numbers = #tpu.dot_dimension_numbers<[1], [0], [0], [1], [0, 0, 1, 1], [], []>} : vector<8x32xf32>, vector<32x32xf32>, vector<8x32xf32> -> vector<8x32xf32>
      %c0_10 = arith.constant 0 : index
      %c0_11 = arith.constant 0 : index
      %17 = vector.load %arg6[%c0_10, %c0_11] : memref<1x32xf32, #tpu.memory_space<vmem>>, vector<1x32xf32>
      %18 = vector.broadcast %17 : vector<1x32xf32> to vector<8x32xf32>
      %19 = arith.addf %16, %18 : vector<8x32xf32>
      %20 = vector.extract_strided_slice %19 {offsets = [0, 0], sizes = [8, 8], strides = [1, 1]} : vector<8x32xf32> to vector<8x8xf32>
      %c0_12 = arith.constant 0 : index
      %c0_13 = arith.constant 0 : index
      %c0_14 = arith.constant 0 : index
      %21 = vector.load %arg20[%c0_12, %c0_13, %c0_14] : memref<4x8x8xf32, #tpu.memory_space<vmem>>, vector<1x8x8xf32>
      %22 = vector.shape_cast %21 : vector<1x8x8xf32> to vector<8x8xf32>
      %23 = vector.shape_cast %20 : vector<8x8xf32> to vector<1x8x8xf32>
      tpu.vector_store %arg20[%c0_12, %c0_13, %c0_14], %23 {strides = array<i32>} : memref<4x8x8xf32, #tpu.memory_space<vmem>>, vector<1x8x8xf32>,
      %24 = vector.extract_strided_slice %19 {offsets = [0, 8], sizes = [8, 8], strides = [1, 1]} : vector<8x32xf32> to vector<8x8xf32>
      %c1 = arith.constant 1 : index
      %c0_15 = arith.constant 0 : index
      %c0_16 = arith.constant 0 : index
      %25 = vector.load %arg20[%c1, %c0_15, %c0_16] : memref<4x8x8xf32, #tpu.memory_space<vmem>>, vector<1x8x8xf32>
      %26 = vector.shape_cast %25 : vector<1x8x8xf32> to vector<8x8xf32>
      %27 = vector.shape_cast %24 : vector<8x8xf32> to vector<1x8x8xf32>
      tpu.vector_store %arg20[%c1, %c0_15, %c0_16], %27 {strides = array<i32>} : memref<4x8x8xf32, #tpu.memory_space<vmem>>, vector<1x8x8xf32>,
      %28 = vector.extract_strided_slice %19 {offsets = [0, 16], sizes = [8, 8], strides = [1, 1]} : vector<8x32xf32> to vector<8x8xf32>
      %c2 = arith.constant 2 : index
      %c0_17 = arith.constant 0 : index
      %c0_18 = arith.constant 0 : index
      %29 = vector.load %arg20[%c2, %c0_17, %c0_18] : memref<4x8x8xf32, #tpu.memory_space<vmem>>, vector<1x8x8xf32>
      %30 = vector.shape_cast %29 : vector<1x8x8xf32> to vector<8x8xf32>
      %31 = vector.shape_cast %28 : vector<8x8xf32> to vector<1x8x8xf32>
      tpu.vector_store %arg20[%c2, %c0_17, %c0_18], %31 {strides = array<i32>} : memref<4x8x8xf32, #tpu.memory_space<vmem>>, vector<1x8x8xf32>,
      %32 = vector.extract_strided_slice %19 {offsets = [0, 24], sizes = [8, 8], strides = [1, 1]} : vector<8x32xf32> to vector<8x8xf32>
      %c3 = arith.constant 3 : index
      %c0_19 = arith.constant 0 : index
      %c0_20 = arith.constant 0 : index
      %33 = vector.load %arg20[%c3, %c0_19, %c0_20] : memref<4x8x8xf32, #tpu.memory_space<vmem>>, vector<1x8x8xf32>
      %34 = vector.shape_cast %33 : vector<1x8x8xf32> to vector<8x8xf32>
      %35 = vector.shape_cast %32 : vector<8x8xf32> to vector<1x8x8xf32>
      tpu.vector_store %arg20[%c3, %c0_19, %c0_20], %35 {strides = array<i32>} : memref<4x8x8xf32, #tpu.memory_space<vmem>>, vector<1x8x8xf32>,
      %cst_21 = arith.constant -1.000000e+30 : f32
      %36 = vector.broadcast %cst_21 : f32 to vector<4x8x1xf32>
      %c0_22 = arith.constant 0 : index
      %c0_23 = arith.constant 0 : index
      %c0_24 = arith.constant 0 : index
      %37 = vector.load %arg23[%c0_22, %c0_23, %c0_24] : memref<4x8x1xf32, #tpu.memory_space<vmem>>, vector<4x8x1xf32>
      tpu.vector_store %arg23[%c0_22, %c0_23, %c0_24], %36 {strides = array<i32>} : memref<4x8x1xf32, #tpu.memory_space<vmem>>, vector<4x8x1xf32>,
      %cst_25 = arith.constant 0.000000e+00 : f32
      %38 = vector.broadcast %cst_25 : f32 to vector<4x8x1xf32>
      %c0_26 = arith.constant 0 : index
      %c0_27 = arith.constant 0 : index
      %c0_28 = arith.constant 0 : index
      %39 = vector.load %arg24[%c0_26, %c0_27, %c0_28] : memref<4x8x1xf32, #tpu.memory_space<vmem>>, vector<4x8x1xf32>
      tpu.vector_store %arg24[%c0_26, %c0_27, %c0_28], %38 {strides = array<i32>} : memref<4x8x1xf32, #tpu.memory_space<vmem>>, vector<4x8x1xf32>,
      %cst_29 = arith.constant 0.000000e+00 : f32
      %40 = vector.broadcast %cst_29 : f32 to vector<4x8x8xf32>
      %c0_30 = arith.constant 0 : index
      %c0_31 = arith.constant 0 : index
      %c0_32 = arith.constant 0 : index
      %41 = vector.load %arg25[%c0_30, %c0_31, %c0_32] : memref<4x8x8xf32, #tpu.memory_space<vmem>>, vector<4x8x8xf32>
      tpu.vector_store %arg25[%c0_30, %c0_31, %c0_32], %40 {strides = array<i32>} : memref<4x8x8xf32, #tpu.memory_space<vmem>>, vector<4x8x8xf32>,
    } else {
    }
    %c8_i32_2 = arith.constant 8 : i32
    %5 = arith.addi %0, %c8_i32_2 : i32
    %c1_i32 = arith.constant 1 : i32
    %6 = arith.subi %5, %c1_i32 : i32
    %7 = arith.cmpi sle, %1, %6 : i32
    %8 = arith.extui %7 : i1 to i32
    %c0_i32_3 = arith.constant 0 : i32
    %9 = arith.cmpi ne, %8, %c0_i32_3 : i32
    scf.if %9 {
      %c0 = arith.constant 0 : index
      %c0_6 = arith.constant 0 : index
      %c0_7 = arith.constant 0 : index
      %13 = vector.load %arg4[%c0, %c0_6, %c0_7] : memref<1x8x32xf32, #tpu.memory_space<vmem>>, vector<1x8x32xf32>
      %14 = vector.shape_cast %13 : vector<1x8x32xf32> to vector<8x32xf32>
      %c0_8 = arith.constant 0 : index
      %c0_9 = arith.constant 0 : index
      %15 = vector.load %arg7[%c0_8, %c0_9] : memref<32x64xf32, #tpu.memory_space<vmem>>, vector<32x64xf32>
      %cst = arith.constant dense<0.000000e+00> : vector<8x64xf32>
      %16 = tpu.matmul %14, %15, %cst {dimension_numbers = #tpu.dot_dimension_numbers<[1], [0], [0], [1], [0, 0, 1, 1], [], []>} : vector<8x32xf32>, vector<32x64xf32>, vector<8x64xf32> -> vector<8x64xf32>
      %c0_10 = arith.constant 0 : index
      %c0_11 = arith.constant 0 : index
      %17 = vector.load %arg8[%c0_10, %c0_11] : memref<1x64xf32, #tpu.memory_space<vmem>>, vector<1x64xf32>
      %18 = vector.broadcast %17 : vector<1x64xf32> to vector<8x64xf32>
      %19 = arith.addf %16, %18 : vector<8x64xf32>
      %20 = vector.extract_strided_slice %19 {offsets = [0, 0], sizes = [8, 8], strides = [1, 1]} : vector<8x64xf32> to vector<8x8xf32>
      %c0_12 = arith.constant 0 : index
      %c0_13 = arith.constant 0 : index
      %c0_14 = arith.constant 0 : index
      %21 = vector.load %arg21[%c0_12, %c0_13, %c0_14] : memref<4x8x8xf32, #tpu.memory_space<vmem>>, vector<1x8x8xf32>
      %22 = vector.shape_cast %21 : vector<1x8x8xf32> to vector<8x8xf32>
      %23 = vector.shape_cast %20 : vector<8x8xf32> to vector<1x8x8xf32>
      tpu.vector_store %arg21[%c0_12, %c0_13, %c0_14], %23 {strides = array<i32>} : memref<4x8x8xf32, #tpu.memory_space<vmem>>, vector<1x8x8xf32>,
      %24 = vector.extract_strided_slice %19 {offsets = [0, 32], sizes = [8, 8], strides = [1, 1]} : vector<8x64xf32> to vector<8x8xf32>
      %c0_15 = arith.constant 0 : index
      %c0_16 = arith.constant 0 : index
      %c0_17 = arith.constant 0 : index
      %25 = vector.load %arg22[%c0_15, %c0_16, %c0_17] : memref<4x8x8xf32, #tpu.memory_space<vmem>>, vector<1x8x8xf32>
      %26 = vector.shape_cast %25 : vector<1x8x8xf32> to vector<8x8xf32>
      %27 = vector.shape_cast %24 : vector<8x8xf32> to vector<1x8x8xf32>
      tpu.vector_store %arg22[%c0_15, %c0_16, %c0_17], %27 {strides = array<i32>} : memref<4x8x8xf32, #tpu.memory_space<vmem>>, vector<1x8x8xf32>,
      %28 = vector.extract_strided_slice %19 {offsets = [0, 8], sizes = [8, 8], strides = [1, 1]} : vector<8x64xf32> to vector<8x8xf32>
      %c1 = arith.constant 1 : index
      %c0_18 = arith.constant 0 : index
      %c0_19 = arith.constant 0 : index
      %29 = vector.load %arg21[%c1, %c0_18, %c0_19] : memref<4x8x8xf32, #tpu.memory_space<vmem>>, vector<1x8x8xf32>
      %30 = vector.shape_cast %29 : vector<1x8x8xf32> to vector<8x8xf32>
      %31 = vector.shape_cast %28 : vector<8x8xf32> to vector<1x8x8xf32>
      tpu.vector_store %arg21[%c1, %c0_18, %c0_19], %31 {strides = array<i32>} : memref<4x8x8xf32, #tpu.memory_space<vmem>>, vector<1x8x8xf32>,
      %32 = vector.extract_strided_slice %19 {offsets = [0, 40], sizes = [8, 8], strides = [1, 1]} : vector<8x64xf32> to vector<8x8xf32>
      %c1_20 = arith.constant 1 : index
      %c0_21 = arith.constant 0 : index
      %c0_22 = arith.constant 0 : index
      %33 = vector.load %arg22[%c1_20, %c0_21, %c0_22] : memref<4x8x8xf32, #tpu.memory_space<vmem>>, vector<1x8x8xf32>
      %34 = vector.shape_cast %33 : vector<1x8x8xf32> to vector<8x8xf32>
      %35 = vector.shape_cast %32 : vector<8x8xf32> to vector<1x8x8xf32>
      tpu.vector_store %arg22[%c1_20, %c0_21, %c0_22], %35 {strides = array<i32>} : memref<4x8x8xf32, #tpu.memory_space<vmem>>, vector<1x8x8xf32>,
      %36 = vector.extract_strided_slice %19 {offsets = [0, 16], sizes = [8, 8], strides = [1, 1]} : vector<8x64xf32> to vector<8x8xf32>
      %c2 = arith.constant 2 : index
      %c0_23 = arith.constant 0 : index
      %c0_24 = arith.constant 0 : index
      %37 = vector.load %arg21[%c2, %c0_23, %c0_24] : memref<4x8x8xf32, #tpu.memory_space<vmem>>, vector<1x8x8xf32>
      %38 = vector.shape_cast %37 : vector<1x8x8xf32> to vector<8x8xf32>
      %39 = vector.shape_cast %36 : vector<8x8xf32> to vector<1x8x8xf32>
      tpu.vector_store %arg21[%c2, %c0_23, %c0_24], %39 {strides = array<i32>} : memref<4x8x8xf32, #tpu.memory_space<vmem>>, vector<1x8x8xf32>,
      %40 = vector.extract_strided_slice %19 {offsets = [0, 48], sizes = [8, 8], strides = [1, 1]} : vector<8x64xf32> to vector<8x8xf32>
      %c2_25 = arith.constant 2 : index
      %c0_26 = arith.constant 0 : index
      %c0_27 = arith.constant 0 : index
      %41 = vector.load %arg22[%c2_25, %c0_26, %c0_27] : memref<4x8x8xf32, #tpu.memory_space<vmem>>, vector<1x8x8xf32>
      %42 = vector.shape_cast %41 : vector<1x8x8xf32> to vector<8x8xf32>
      %43 = vector.shape_cast %40 : vector<8x8xf32> to vector<1x8x8xf32>
      tpu.vector_store %arg22[%c2_25, %c0_26, %c0_27], %43 {strides = array<i32>} : memref<4x8x8xf32, #tpu.memory_space<vmem>>, vector<1x8x8xf32>,
      %44 = vector.extract_strided_slice %19 {offsets = [0, 24], sizes = [8, 8], strides = [1, 1]} : vector<8x64xf32> to vector<8x8xf32>
      %c3 = arith.constant 3 : index
      %c0_28 = arith.constant 0 : index
      %c0_29 = arith.constant 0 : index
      %45 = vector.load %arg21[%c3, %c0_28, %c0_29] : memref<4x8x8xf32, #tpu.memory_space<vmem>>, vector<1x8x8xf32>
      %46 = vector.shape_cast %45 : vector<1x8x8xf32> to vector<8x8xf32>
      %47 = vector.shape_cast %44 : vector<8x8xf32> to vector<1x8x8xf32>
      tpu.vector_store %arg21[%c3, %c0_28, %c0_29], %47 {strides = array<i32>} : memref<4x8x8xf32, #tpu.memory_space<vmem>>, vector<1x8x8xf32>,
      %48 = vector.extract_strided_slice %19 {offsets = [0, 56], sizes = [8, 8], strides = [1, 1]} : vector<8x64xf32> to vector<8x8xf32>
      %c3_30 = arith.constant 3 : index
      %c0_31 = arith.constant 0 : index
      %c0_32 = arith.constant 0 : index
      %49 = vector.load %arg22[%c3_30, %c0_31, %c0_32] : memref<4x8x8xf32, #tpu.memory_space<vmem>>, vector<1x8x8xf32>
      %50 = vector.shape_cast %49 : vector<1x8x8xf32> to vector<8x8xf32>
      %51 = vector.shape_cast %48 : vector<8x8xf32> to vector<1x8x8xf32>
      tpu.vector_store %arg22[%c3_30, %c0_31, %c0_32], %51 {strides = array<i32>} : memref<4x8x8xf32, #tpu.memory_space<vmem>>, vector<1x8x8xf32>,
      %c0_33 = arith.constant 0 : index
      %c0_34 = arith.constant 0 : index
      %c0_35 = arith.constant 0 : index
      %52 = vector.load %arg20[%c0_33, %c0_34, %c0_35] : memref<4x8x8xf32, #tpu.memory_space<vmem>>, vector<4x8x8xf32>
      %c0_36 = arith.constant 0 : index
      %c0_37 = arith.constant 0 : index
      %c0_38 = arith.constant 0 : index
      %53 = vector.load %arg21[%c0_36, %c0_37, %c0_38] : memref<4x8x8xf32, #tpu.memory_space<vmem>>, vector<4x8x8xf32>
      %c0_39 = arith.constant 0 : index
      %c0_40 = arith.constant 0 : index
      %c0_41 = arith.constant 0 : index
      %54 = vector.load %arg22[%c0_39, %c0_40, %c0_41] : memref<4x8x8xf32, #tpu.memory_space<vmem>>, vector<4x8x8xf32>
      "tpu.trace_start"() <{level = 10 : i32, message = "hqd,hkd->hqk"}> : () -> ()
      %cst_42 = arith.constant dense<0.000000e+00> : vector<4x8x8xf32>
      %55 = tpu.matmul %52, %53, %cst_42 {dimension_numbers = #tpu.dot_dimension_numbers<[2], [2], [1], [1], [0, 0, 0, 1, 1, 1], [0], [0]>} : vector<4x8x8xf32>, vector<4x8x8xf32>, vector<4x8x8xf32> -> vector<4x8x8xf32>
      "tpu.trace_stop"() : () -> ()
      %cst_43 = arith.constant 0.353553385 : f32
      %56 = vector.broadcast %cst_43 : f32 to vector<4x8x8xf32>
      %57 = arith.mulf %55, %56 : vector<4x8x8xf32>
      %58 = tpu.iota {dimensions = array<i32: 1>} : vector<4x8x8xi32>
      %59 = vector.broadcast %0 : i32 to vector<4x8x8xi32>
      %60 = arith.addi %59, %58 : vector<4x8x8xi32>
      %61 = tpu.iota {dimensions = array<i32: 2>} : vector<4x8x8xi32>
      %62 = vector.broadcast %1 : i32 to vector<4x8x8xi32>
      %63 = arith.addi %62, %61 : vector<4x8x8xi32>
      %64 = arith.cmpi sgt, %63, %60 : vector<4x8x8xi32>
      %cst_44 = arith.constant -1.000000e+30 : f32
      %65 = vector.broadcast %cst_44 : f32 to vector<4x8x8xf32>
      %66 = arith.select %64, %65, %57 : vector<4x8x8xi1>, vector<4x8x8xf32>
      %c0_45 = arith.constant 0 : index
      %c0_46 = arith.constant 0 : index
      %c0_47 = arith.constant 0 : index
      %67 = vector.load %arg23[%c0_45, %c0_46, %c0_47] : memref<4x8x1xf32, #tpu.memory_space<vmem>>, vector<4x8x1xf32>
      %cst_48 = arith.constant dense<0xFF800000> : vector<4x8xf32>
      %68 = vector.multi_reduction <maximumf>, %66, %cst_48 [2] : vector<4x8x8xf32> to vector<4x8xf32>
      %69 = vector.shape_cast %68 : vector<4x8xf32> to vector<4x8x1xf32>
      %70 = arith.maximumf %67, %69 : vector<4x8x1xf32>
      %71 = arith.subf %67, %70 : vector<4x8x1xf32>
      %72 = math.exp %71 : vector<4x8x1xf32>
      %73 = vector.broadcast %70 : vector<4x8x1xf32> to vector<4x8x8xf32>
      %74 = arith.subf %66, %73 : vector<4x8x8xf32>
      %75 = math.exp %74 : vector<4x8x8xf32>
      %c0_49 = arith.constant 0 : index
      %c0_50 = arith.constant 0 : index
      %c0_51 = arith.constant 0 : index
      %76 = vector.load %arg24[%c0_49, %c0_50, %c0_51] : memref<4x8x1xf32, #tpu.memory_space<vmem>>, vector<4x8x1xf32>
      %77 = arith.mulf %72, %76 : vector<4x8x1xf32>
      %cst_52 = arith.constant dense<0.000000e+00> : vector<4x8xf32>
      %78 = vector.multi_reduction <add>, %75, %cst_52 [2] : vector<4x8x8xf32> to vector<4x8xf32>
      %79 = vector.shape_cast %78 : vector<4x8xf32> to vector<4x8x1xf32>
      %80 = arith.addf %77, %79 : vector<4x8x1xf32>
      %c0_53 = arith.constant 0 : index
      %c0_54 = arith.constant 0 : index
      %c0_55 = arith.constant 0 : index
      %81 = vector.load %arg24[%c0_53, %c0_54, %c0_55] : memref<4x8x1xf32, #tpu.memory_space<vmem>>, vector<4x8x1xf32>
      tpu.vector_store %arg24[%c0_53, %c0_54, %c0_55], %80 {strides = array<i32>} : memref<4x8x1xf32, #tpu.memory_space<vmem>>, vector<4x8x1xf32>,
      %c0_56 = arith.constant 0 : index
      %c0_57 = arith.constant 0 : index
      %c0_58 = arith.constant 0 : index
      %82 = vector.load %arg25[%c0_56, %c0_57, %c0_58] : memref<4x8x8xf32, #tpu.memory_space<vmem>>, vector<4x8x8xf32>
      %83 = vector.broadcast %72 : vector<4x8x1xf32> to vector<4x8x8xf32>
      %84 = arith.mulf %83, %82 : vector<4x8x8xf32>
      "tpu.trace_start"() <{level = 10 : i32, message = "hqk,hkd->hqd"}> : () -> ()
      %cst_59 = arith.constant dense<0.000000e+00> : vector<4x8x8xf32>
      %85 = tpu.matmul %75, %54, %cst_59 {dimension_numbers = #tpu.dot_dimension_numbers<[2], [1], [1], [2], [0, 0, 0, 1, 1, 2], [0], [0]>} : vector<4x8x8xf32>, vector<4x8x8xf32>, vector<4x8x8xf32> -> vector<4x8x8xf32>
      "tpu.trace_stop"() : () -> ()
      %86 = arith.addf %84, %85 : vector<4x8x8xf32>
      %c0_60 = arith.constant 0 : index
      %c0_61 = arith.constant 0 : index
      %c0_62 = arith.constant 0 : index
      %87 = vector.load %arg25[%c0_60, %c0_61, %c0_62] : memref<4x8x8xf32, #tpu.memory_space<vmem>>, vector<4x8x8xf32>
      tpu.vector_store %arg25[%c0_60, %c0_61, %c0_62], %86 {strides = array<i32>} : memref<4x8x8xf32, #tpu.memory_space<vmem>>, vector<4x8x8xf32>,
      %c0_63 = arith.constant 0 : index
      %c0_64 = arith.constant 0 : index
      %c0_65 = arith.constant 0 : index
      %88 = vector.load %arg23[%c0_63, %c0_64, %c0_65] : memref<4x8x1xf32, #tpu.memory_space<vmem>>, vector<4x8x1xf32>
      tpu.vector_store %arg23[%c0_63, %c0_64, %c0_65], %70 {strides = array<i32>} : memref<4x8x1xf32, #tpu.memory_space<vmem>>, vector<4x8x1xf32>,
    } else {
    }
    %c1_i32_4 = arith.constant 1 : i32
    %10 = arith.cmpi eq, %arg2, %c1_i32_4 : i32
    %11 = arith.extui %10 : i1 to i32
    %c0_i32_5 = arith.constant 0 : i32
    %12 = arith.cmpi ne, %11, %c0_i32_5 : i32
    scf.if %12 {
      %c0 = arith.constant 0 : index
      %c0_6 = arith.constant 0 : index
      %c0_7 = arith.constant 0 : index
      %13 = vector.load %arg24[%c0, %c0_6, %c0_7] : memref<4x8x1xf32, #tpu.memory_space<vmem>>, vector<1x8x1xf32>
      %14 = vector.shape_cast %13 : vector<1x8x1xf32> to vector<8x1xf32>
      %15 = tpu.reciprocal %14 {approx = true} : vector<8x1xf32> -> vector<8x1xf32>
      %c0_8 = arith.constant 0 : index
      %c0_9 = arith.constant 0 : index
      %c0_10 = arith.constant 0 : index
      %16 = vector.load %arg25[%c0_8, %c0_9, %c0_10] : memref<4x8x8xf32, #tpu.memory_space<vmem>>, vector<1x8x8xf32>
      %17 = vector.shape_cast %16 : vector<1x8x8xf32> to vector<8x8xf32>
      %18 = vector.broadcast %15 : vector<8x1xf32> to vector<8x8xf32>
      %19 = arith.mulf %17, %18 : vector<8x8xf32>
      %c0_11 = arith.constant 0 : index
      %c0_12 = arith.constant 0 : index
      %20 = vector.load %arg26[%c0_11, %c0_12] : memref<8x32xf32, #tpu.memory_space<vmem>>, vector<8x8xf32>
      tpu.vector_store %arg26[%c0_11, %c0_12], %19 {strides = array<i32>} : memref<8x32xf32, #tpu.memory_space<vmem>>, vector<8x8xf32>,
      %c1 = arith.constant 1 : index
      %c0_13 = arith.constant 0 : index
      %c0_14 = arith.constant 0 : index
      %21 = vector.load %arg24[%c1, %c0_13, %c0_14] : memref<4x8x1xf32, #tpu.memory_space<vmem>>, vector<1x8x1xf32>
      %22 = vector.shape_cast %21 : vector<1x8x1xf32> to vector<8x1xf32>
      %23 = tpu.reciprocal %22 {approx = true} : vector<8x1xf32> -> vector<8x1xf32>
      %c1_15 = arith.constant 1 : index
      %c0_16 = arith.constant 0 : index
      %c0_17 = arith.constant 0 : index
      %24 = vector.load %arg25[%c1_15, %c0_16, %c0_17] : memref<4x8x8xf32, #tpu.memory_space<vmem>>, vector<1x8x8xf32>
      %25 = vector.shape_cast %24 : vector<1x8x8xf32> to vector<8x8xf32>
      %26 = vector.broadcast %23 : vector<8x1xf32> to vector<8x8xf32>
      %27 = arith.mulf %25, %26 : vector<8x8xf32>
      %c0_18 = arith.constant 0 : index
      %c8 = arith.constant 8 : index
      %28 = vector.load %arg26[%c0_18, %c8] : memref<8x32xf32, #tpu.memory_space<vmem>>, vector<8x8xf32>
      tpu.vector_store %arg26[%c0_18, %c8], %27 {strides = array<i32>} : memref<8x32xf32, #tpu.memory_space<vmem>>, vector<8x8xf32>,
      %c2 = arith.constant 2 : index
      %c0_19 = arith.constant 0 : index
      %c0_20 = arith.constant 0 : index
      %29 = vector.load %arg24[%c2, %c0_19, %c0_20] : memref<4x8x1xf32, #tpu.memory_space<vmem>>, vector<1x8x1xf32>
      %30 = vector.shape_cast %29 : vector<1x8x1xf32> to vector<8x1xf32>
      %31 = tpu.reciprocal %30 {approx = true} : vector<8x1xf32> -> vector<8x1xf32>
      %c2_21 = arith.constant 2 : index
      %c0_22 = arith.constant 0 : index
      %c0_23 = arith.constant 0 : index
      %32 = vector.load %arg25[%c2_21, %c0_22, %c0_23] : memref<4x8x8xf32, #tpu.memory_space<vmem>>, vector<1x8x8xf32>
      %33 = vector.shape_cast %32 : vector<1x8x8xf32> to vector<8x8xf32>
      %34 = vector.broadcast %31 : vector<8x1xf32> to vector<8x8xf32>
      %35 = arith.mulf %33, %34 : vector<8x8xf32>
      %c0_24 = arith.constant 0 : index
      %c16 = arith.constant 16 : index
      %36 = vector.load %arg26[%c0_24, %c16] : memref<8x32xf32, #tpu.memory_space<vmem>>, vector<8x8xf32>
      tpu.vector_store %arg26[%c0_24, %c16], %35 {strides = array<i32>} : memref<8x32xf32, #tpu.memory_space<vmem>>, vector<8x8xf32>,
      %c3 = arith.constant 3 : index
      %c0_25 = arith.constant 0 : index
      %c0_26 = arith.constant 0 : index
      %37 = vector.load %arg24[%c3, %c0_25, %c0_26] : memref<4x8x1xf32, #tpu.memory_space<vmem>>, vector<1x8x1xf32>
      %38 = vector.shape_cast %37 : vector<1x8x1xf32> to vector<8x1xf32>
      %39 = tpu.reciprocal %38 {approx = true} : vector<8x1xf32> -> vector<8x1xf32>
      %c3_27 = arith.constant 3 : index
      %c0_28 = arith.constant 0 : index
      %c0_29 = arith.constant 0 : index
      %40 = vector.load %arg25[%c3_27, %c0_28, %c0_29] : memref<4x8x8xf32, #tpu.memory_space<vmem>>, vector<1x8x8xf32>
      %41 = vector.shape_cast %40 : vector<1x8x8xf32> to vector<8x8xf32>
      %42 = vector.broadcast %39 : vector<8x1xf32> to vector<8x8xf32>
      %43 = arith.mulf %41, %42 : vector<8x8xf32>
      %c0_30 = arith.constant 0 : index
      %c24 = arith.constant 24 : index
      %44 = vector.load %arg26[%c0_30, %c24] : memref<8x32xf32, #tpu.memory_space<vmem>>, vector<8x8xf32>
      tpu.vector_store %arg26[%c0_30, %c24], %43 {strides = array<i32>} : memref<8x32xf32, #tpu.memory_space<vmem>>, vector<8x8xf32>,
      %c0_31 = arith.constant 0 : index
      %c0_32 = arith.constant 0 : index
      %45 = vector.load %arg26[%c0_31, %c0_32] : memref<8x32xf32, #tpu.memory_space<vmem>>, vector<8x32xf32>
      %c0_33 = arith.constant 0 : index
      %c0_34 = arith.constant 0 : index
      %46 = vector.load %arg9[%c0_33, %c0_34] : memref<32x32xf32, #tpu.memory_space<vmem>>, vector<32x32xf32>
      %cst = arith.constant dense<0.000000e+00> : vector<8x32xf32>
      %47 = tpu.matmul %45, %46, %cst {dimension_numbers = #tpu.dot_dimension_numbers<[1], [0], [0], [1], [0, 0, 1, 1], [], []>} : vector<8x32xf32>, vector<32x32xf32>, vector<8x32xf32> -> vector<8x32xf32>
      %c0_35 = arith.constant 0 : index
      %c0_36 = arith.constant 0 : index
      %48 = vector.load %arg10[%c0_35, %c0_36] : memref<1x32xf32, #tpu.memory_space<vmem>>, vector<1x32xf32>
      %49 = vector.broadcast %48 : vector<1x32xf32> to vector<8x32xf32>
      %50 = arith.addf %47, %49 : vector<8x32xf32>
      %c0_37 = arith.constant 0 : index
      %c0_38 = arith.constant 0 : index
      %c0_39 = arith.constant 0 : index
      %51 = vector.load %arg3[%c0_37, %c0_38, %c0_39] : memref<1x8x32xf32, #tpu.memory_space<vmem>>, vector<1x8x32xf32>
      %52 = vector.shape_cast %51 : vector<1x8x32xf32> to vector<8x32xf32>
      %53 = arith.addf %52, %50 : vector<8x32xf32>
      %cst_40 = arith.constant dense<0.000000e+00> : vector<8xf32>
      %54 = vector.multi_reduction <add>, %53, %cst_40 [1] : vector<8x32xf32> to vector<8xf32>
      %55 = vector.shape_cast %54 : vector<8xf32> to vector<8x1xf32>
      %cst_41 = arith.constant 3.200000e+01 : f32
      %56 = vector.broadcast %cst_41 : f32 to vector<8x1xf32>
      %57 = arith.divf %55, %56 : vector<8x1xf32>
      %58 = vector.broadcast %57 : vector<8x1xf32> to vector<8x32xf32>
      %59 = arith.subf %53, %58 : vector<8x32xf32>
      %60 = arith.mulf %59, %59 : vector<8x32xf32>
      %cst_42 = arith.constant dense<0.000000e+00> : vector<8xf32>
      %61 = vector.multi_reduction <add>, %60, %cst_42 [1] : vector<8x32xf32> to vector<8xf32>
      %62 = vector.shape_cast %61 : vector<8xf32> to vector<8x1xf32>
      %cst_43 = arith.constant 3.200000e+01 : f32
      %63 = vector.broadcast %cst_43 : f32 to vector<8x1xf32>
      %64 = arith.divf %62, %63 : vector<8x1xf32>
      %65 = vector.broadcast %57 : vector<8x1xf32> to vector<8x32xf32>
      %66 = arith.subf %53, %65 : vector<8x32xf32>
      %cst_44 = arith.constant 9.99999974E-6 : f32
      %67 = vector.broadcast %cst_44 : f32 to vector<8x1xf32>
      %68 = arith.addf %64, %67 : vector<8x1xf32>
      %69 = math.rsqrt %68 : vector<8x1xf32>
      %70 = vector.broadcast %69 : vector<8x1xf32> to vector<8x32xf32>
      %71 = arith.mulf %66, %70 : vector<8x32xf32>
      %c0_45 = arith.constant 0 : index
      %c0_46 = arith.constant 0 : index
      %72 = vector.load %arg11[%c0_45, %c0_46] : memref<1x32xf32, #tpu.memory_space<vmem>>, vector<1x32xf32>
      %73 = vector.broadcast %72 : vector<1x32xf32> to vector<8x32xf32>
      %74 = arith.mulf %71, %73 : vector<8x32xf32>
      %c0_47 = arith.constant 0 : index
      %c0_48 = arith.constant 0 : index
      %75 = vector.load %arg12[%c0_47, %c0_48] : memref<1x32xf32, #tpu.memory_space<vmem>>, vector<1x32xf32>
      %76 = vector.broadcast %75 : vector<1x32xf32> to vector<8x32xf32>
      %77 = arith.addf %74, %76 : vector<8x32xf32>
      %c0_49 = arith.constant 0 : index
      %c0_50 = arith.constant 0 : index
      %78 = vector.load %arg13[%c0_49, %c0_50] : memref<32x64xf32, #tpu.memory_space<vmem>>, vector<32x64xf32>
      %cst_51 = arith.constant dense<0.000000e+00> : vector<8x64xf32>
      %79 = tpu.matmul %77, %78, %cst_51 {dimension_numbers = #tpu.dot_dimension_numbers<[1], [0], [0], [1], [0, 0, 1, 1], [], []>} : vector<8x32xf32>, vector<32x64xf32>, vector<8x64xf32> -> vector<8x64xf32>
      %c0_52 = arith.constant 0 : index
      %c0_53 = arith.constant 0 : index
      %80 = vector.load %arg14[%c0_52, %c0_53] : memref<1x64xf32, #tpu.memory_space<vmem>>, vector<1x64xf32>
      %81 = vector.broadcast %80 : vector<1x64xf32> to vector<8x64xf32>
      %82 = arith.addf %79, %81 : vector<8x64xf32>
      %cst_54 = arith.constant 0.000000e+00 : f32
      %83 = vector.broadcast %cst_54 : f32 to vector<8x64xf32>
      %84 = arith.maximumf %82, %83 : vector<8x64xf32>
      %c0_55 = arith.constant 0 : index
      %c0_56 = arith.constant 0 : index
      %85 = vector.load %arg15[%c0_55, %c0_56] : memref<64x32xf32, #tpu.memory_space<vmem>>, vector<64x32xf32>
      %cst_57 = arith.constant dense<0.000000e+00> : vector<8x32xf32>
      %86 = tpu.matmul %84, %85, %cst_57 {dimension_numbers = #tpu.dot_dimension_numbers<[1], [0], [0], [1], [0, 0, 1, 1], [], []>} : vector<8x64xf32>, vector<64x32xf32>, vector<8x32xf32> -> vector<8x32xf32>
      %c0_58 = arith.constant 0 : index
      %c0_59 = arith.constant 0 : index
      %87 = vector.load %arg16[%c0_58, %c0_59] : memref<1x32xf32, #tpu.memory_space<vmem>>, vector<1x32xf32>
      %88 = vector.broadcast %87 : vector<1x32xf32> to vector<8x32xf32>
      %89 = arith.addf %86, %88 : vector<8x32xf32>
      %90 = arith.addf %77, %89 : vector<8x32xf32>
      %cst_60 = arith.constant dense<0.000000e+00> : vector<8xf32>
      %91 = vector.multi_reduction <add>, %90, %cst_60 [1] : vector<8x32xf32> to vector<8xf32>
      %92 = vector.shape_cast %91 : vector<8xf32> to vector<8x1xf32>
      %cst_61 = arith.constant 3.200000e+01 : f32
      %93 = vector.broadcast %cst_61 : f32 to vector<8x1xf32>
      %94 = arith.divf %92, %93 : vector<8x1xf32>
      %95 = vector.broadcast %94 : vector<8x1xf32> to vector<8x32xf32>
      %96 = arith.subf %90, %95 : vector<8x32xf32>
      %97 = arith.mulf %96, %96 : vector<8x32xf32>
      %cst_62 = arith.constant dense<0.000000e+00> : vector<8xf32>
      %98 = vector.multi_reduction <add>, %97, %cst_62 [1] : vector<8x32xf32> to vector<8xf32>
      %99 = vector.shape_cast %98 : vector<8xf32> to vector<8x1xf32>
      %cst_63 = arith.constant 3.200000e+01 : f32
      %100 = vector.broadcast %cst_63 : f32 to vector<8x1xf32>
      %101 = arith.divf %99, %100 : vector<8x1xf32>
      %102 = vector.broadcast %94 : vector<8x1xf32> to vector<8x32xf32>
      %103 = arith.subf %90, %102 : vector<8x32xf32>
      %cst_64 = arith.constant 9.99999974E-6 : f32
      %104 = vector.broadcast %cst_64 : f32 to vector<8x1xf32>
      %105 = arith.addf %101, %104 : vector<8x1xf32>
      %106 = math.rsqrt %105 : vector<8x1xf32>
      %107 = vector.broadcast %106 : vector<8x1xf32> to vector<8x32xf32>
      %108 = arith.mulf %103, %107 : vector<8x32xf32>
      %c0_65 = arith.constant 0 : index
      %c0_66 = arith.constant 0 : index
      %109 = vector.load %arg17[%c0_65, %c0_66] : memref<1x32xf32, #tpu.memory_space<vmem>>, vector<1x32xf32>
      %110 = vector.broadcast %109 : vector<1x32xf32> to vector<8x32xf32>
      %111 = arith.mulf %108, %110 : vector<8x32xf32>
      %c0_67 = arith.constant 0 : index
      %c0_68 = arith.constant 0 : index
      %112 = vector.load %arg18[%c0_67, %c0_68] : memref<1x32xf32, #tpu.memory_space<vmem>>, vector<1x32xf32>
      %113 = vector.broadcast %112 : vector<1x32xf32> to vector<8x32xf32>
      %114 = arith.addf %111, %113 : vector<8x32xf32>
      %c0_69 = arith.constant 0 : index
      %c0_70 = arith.constant 0 : index
      %c0_71 = arith.constant 0 : index
      %115 = vector.load %arg19[%c0_69, %c0_70, %c0_71] : memref<1x8x32xf32, #tpu.memory_space<vmem>>, vector<1x8x32xf32>
      %116 = vector.shape_cast %115 : vector<1x8x32xf32> to vector<8x32xf32>
      %117 = vector.shape_cast %114 : vector<8x32xf32> to vector<1x8x32xf32>
      tpu.vector_store %arg19[%c0_69, %c0_70, %c0_71], %117 {strides = array<i32>} : memref<1x8x32xf32, #tpu.memory_space<vmem>>, vector<1x8x32xf32>,
    } else {
    }
    return
  }
  func.func @transform_0(%arg0: i32, %arg1: i32, %arg2: i32) -> (i32, i32, i32) {
    %c0_i32 = arith.constant 0 : i32
    %c0_i32_0 = arith.constant 0 : i32
    return %arg0, %arg1, %c0_i32 : i32, i32, i32
  }
  func.func @transform_1(%arg0: i32, %arg1: i32, %arg2: i32) -> (i32, i32, i32) {
    %c0_i32 = arith.constant 0 : i32
    %c0_i32_0 = arith.constant 0 : i32
    return %arg0, %arg2, %c0_i32 : i32, i32, i32
  }
  func.func @transform_2(%arg0: i32, %arg1: i32, %arg2: i32) -> (i32, i32) {
    %c0_i32 = arith.constant 0 : i32
    %c0_i32_0 = arith.constant 0 : i32
    %c0_i32_1 = arith.constant 0 : i32
    return %c0_i32, %c0_i32_0 : i32, i32
  }
  func.func @transform_3(%arg0: i32, %arg1: i32, %arg2: i32) -> (i32, i32) {
    %c0_i32 = arith.constant 0 : i32
    %c0_i32_0 = arith.constant 0 : i32
    %c0_i32_1 = arith.constant 0 : i32
    return %c0_i32, %c0_i32_0 : i32, i32
  }
  func.func @transform_4(%arg0: i32, %arg1: i32, %arg2: i32) -> (i32, i32) {
    %c0_i32 = arith.constant 0 : i32
    %c0_i32_0 = arith.constant 0 : i32
    %c0_i32_1 = arith.constant 0 : i32
    return %c0_i32, %c0_i32_0 : i32, i32
  }
  func.func @transform_5(%arg0: i32, %arg1: i32, %arg2: i32) -> (i32, i32) {
    %c0_i32 = arith.constant 0 : i32
    %c0_i32_0 = arith.constant 0 : i32
    %c0_i32_1 = arith.constant 0 : i32
    return %c0_i32, %c0_i32_0 : i32, i32
  }
  func.func @transform_6(%arg0: i32, %arg1: i32, %arg2: i32) -> (i32, i32) {
    %c0_i32 = arith.constant 0 : i32
    %c0_i32_0 = arith.constant 0 : i32
    %c0_i32_1 = arith.constant 0 : i32
    return %c0_i32, %c0_i32_0 : i32, i32
  }
  func.func @transform_7(%arg0: i32, %arg1: i32, %arg2: i32) -> (i32, i32) {
    %c0_i32 = arith.constant 0 : i32
    %c0_i32_0 = arith.constant 0 : i32
    %c0_i32_1 = arith.constant 0 : i32
    return %c0_i32, %c0_i32_0 : i32, i32
  }
  func.func @transform_8(%arg0: i32, %arg1: i32, %arg2: i32) -> (i32, i32) {
    %c0_i32 = arith.constant 0 : i32
    %c0_i32_0 = arith.constant 0 : i32
    %c0_i32_1 = arith.constant 0 : i32
    return %c0_i32, %c0_i32_0 : i32, i32
  }
  func.func @transform_9(%arg0: i32, %arg1: i32, %arg2: i32) -> (i32, i32) {
    %c0_i32 = arith.constant 0 : i32
    %c0_i32_0 = arith.constant 0 : i32
    %c0_i32_1 = arith.constant 0 : i32
    return %c0_i32, %c0_i32_0 : i32, i32
  }
  func.func @transform_10(%arg0: i32, %arg1: i32, %arg2: i32) -> (i32, i32) {
    %c0_i32 = arith.constant 0 : i32
    %c0_i32_0 = arith.constant 0 : i32
    %c0_i32_1 = arith.constant 0 : i32
    return %c0_i32, %c0_i32_0 : i32, i32
  }
  func.func @transform_11(%arg0: i32, %arg1: i32, %arg2: i32) -> (i32, i32) {
    %c0_i32 = arith.constant 0 : i32
    %c0_i32_0 = arith.constant 0 : i32
    %c0_i32_1 = arith.constant 0 : i32
    return %c0_i32, %c0_i32_0 : i32, i32
  }
  func.func @transform_12(%arg0: i32, %arg1: i32, %arg2: i32) -> (i32, i32) {
    %c0_i32 = arith.constant 0 : i32
    %c0_i32_0 = arith.constant 0 : i32
    %c0_i32_1 = arith.constant 0 : i32
    return %c0_i32, %c0_i32_0 : i32, i32
  }
  func.func @transform_13(%arg0: i32, %arg1: i32, %arg2: i32) -> (i32, i32) {
    %c0_i32 = arith.constant 0 : i32
    %c0_i32_0 = arith.constant 0 : i32
    %c0_i32_1 = arith.constant 0 : i32
    return %c0_i32, %c0_i32_0 : i32, i32
  }
  func.func @transform_14(%arg0: i32, %arg1: i32, %arg2: i32) -> (i32, i32) {
    %c0_i32 = arith.constant 0 : i32
    %c0_i32_0 = arith.constant 0 : i32
    %c0_i32_1 = arith.constant 0 : i32
    return %c0_i32, %c0_i32_0 : i32, i32
  }
  func.func @transform_15(%arg0: i32, %arg1: i32, %arg2: i32) -> (i32, i32) {
    %c0_i32 = arith.constant 0 : i32
    %c0_i32_0 = arith.constant 0 : i32
    %c0_i32_1 = arith.constant 0 : i32
    return %c0_i32, %c0_i32_0 : i32, i32
  }
  func.func @transform_16(%arg0: i32, %arg1: i32, %arg2: i32) -> (i32, i32, i32) {
    %c0_i32 = arith.constant 0 : i32
    %c0_i32_0 = arith.constant 0 : i32
    return %arg0, %arg1, %c0_i32 : i32, i32, i32
  }
}

</mosaic_0001>

<bundles_post_ra>
// kernel: tpu_custom_call.1
= control target key start
LH: loop header
LB: loop body
LE: loop exit
PB: predicated region body
PF: predicated region fallthrough
CT: control target
= control target key end

     0   :  { %s3407_s0 = inlined_call_operand.vmem [shape: f32[2,16,32], index: 0, kind: input, shape index: {}]   ;;  %s3408_s1 = inlined_call_operand.vmem [shape: f32[2,16,32], index: 1, kind: input, shape index: {}]   ;;  %s3409_s2 = inlined_call_operand.vmem [shape: f32[32,32], index: 2, kind: input, shape index: {}]   ;;  %s3410_s3 = inlined_call_operand.vmem [shape: f32[1,32], index: 3, kind: input, shape index: {}]   ;;  %s3411_s4 = inlined_call_operand.hbm [shape: f32[32,64], index: 4, kind: input, shape index: {}]   ;;  %s3412_s5 = inlined_call_operand.vmem [shape: f32[1,64], index: 5, kind: input, shape index: {}]   ;;  %s3413_s6 = inlined_call_operand.hbm [shape: f32[32,32], index: 6, kind: input, shape index: {}]   ;;  %s3414_s7 = inlined_call_operand.vmem [shape: f32[1,32], index: 7, kind: input, shape index: {}]   ;;  %s3415_s8 = inlined_call_operand.vmem [shape: f32[1,32], index: 8, kind: input, shape index: {}]   ;;  %s3416_s9 = inlined_call_operand.vmem [shape: f32[1,32], index: 9, kind: input, shape index: {}]   ;;  %s3417_s10 = inlined_call_operand.hbm [shape: f32[32,64], index: 10, kind: input, shape index: {}]   ;;  %s3418_s11 = inlined_call_operand.vmem [shape: f32[1,64], index: 11, kind: input, shape index: {}]   ;;  %s3419_s12 = inlined_call_operand.vmem [shape: f32[64,32], index: 12, kind: input, shape index: {}]   ;;  %s3420_s13 = inlined_call_operand.vmem [shape: f32[1,32], index: 13, kind: input, shape index: {}]   ;;  %s3421_s14 = inlined_call_operand.vmem [shape: f32[1,32], index: 14, kind: input, shape index: {}]   ;;  %s3422_s15 = inlined_call_operand.vmem [shape: f32[1,32], index: 15, kind: input, shape index: {}]   ;;  %s3423_s16 = inlined_call_operand.hbm [shape: f32[2,16,32], index: 16, kind: output, shape index: {}]  }
   0x1   :  { %3442 = sst [smem:[#allocation31_spill]] %s3407_s0 }
   0x2   :  { %3443 = sst [smem:[#allocation32_spill]] %s3411_s4 }
   0x3   :  { %3444 = sst [smem:[#allocation33_spill]] %s3415_s8 }
   0x4   :  { %3445 = sst [smem:[#allocation34_spill]] %s3416_s9 }
   0x5   :  { %3446 = sst [smem:[#allocation35_spill]] %s3418_s11 }
   0x6   :  { %3447 = sst [smem:[#allocation36_spill]] %s3420_s13 }
   0x7   :  { %3448 = sst [smem:[#allocation37_spill]] %s3421_s14 }
   0x8   :  { %3449 = sst [smem:[#allocation38_spill]] %s3422_s15 }
   0x9   :  { %3450 = sst [smem:[#allocation39_spill]] %s3423_s16 }
   0xa   :  { %21 = vsyncpa [#allocation10], 0 }
   0xb   :  { %22 = vsyncpa [#allocation13], 0 }
   0xc   :  { %23 = vsyncpa [#allocation11], 0 }
   0xd   :  { %25 = vsyncpa [#allocation11 + $0x1], 0  ;;  %s2907_s21 = smov 0   ;;  %s2909_s22 = smov 0  }
   0xe   :  { %s2911_s23 = smov 0   ;;  %s2913_s24 = smov 0  }
   0xf   :  { %s2915_s25 = smov 0   ;;  %s2917_s26 = smov 0  }
  0x10   :  { %s2919_s27 = smov 0   ;;  %s2921_s28 = smov 0  }
  0x11   :  { %s2923_s29 = smov 0   ;;  %s2925_s30 = smov 0  }
  0x12 LB: > { %3451 = sst [smem:[#allocation19_spill]] %s2753_s21  ;;  %s2174_s0 = sadd.s32 4294967295, %s2789_s30   ;;  %s2789_s30 = sphi %s2925_s30, %s31_s30   ;;  %s2785_s29 = sphi %s2923_s29, %s3494_s29   ;;  %s2781_s28 = sphi %s2921_s28, %s3493_s28   ;;  %s2777_s27 = sphi %s2919_s27, %s3492_s27   ;;  %s2773_s26 = sphi %s2917_s26, %s3491_s26   ;;  %s2769_s25 = sphi %s2915_s25, %s3490_s25   ;;  %s2765_s24 = sphi %s2913_s24, %s3489_s24   ;;  %s2761_s23 = sphi %s2911_s23, %s3488_s23   ;;  %s2757_s22 = sphi %s2909_s22, %s3496_s22   ;;  %s2753_s21 = sphi %s2907_s21, %s3495_s21  }
  0x13   : > { %3452 = sst [smem:[#allocation20_spill]] %s2761_s23  ;;  %s2175_s17 = sadd.s32 4294967294, %s2789_s30  }
  0x14   : > { %3453 = sst [smem:[#allocation21_spill]] %s2777_s27  ;;  %s43_s18 = sadd.s32 1, %s2777_s27 }
  0x15   : > { %3454 = sst [smem:[#allocation22_spill]] %s2781_s28  ;;  %s46_s19 = sadd.s32 1, %s2781_s28 }
  0x16   : > { %3455 = sst [smem:[#allocation23_spill]] %s2785_s29  ;;  %p44_p0 = scmp.ge.s32.totalorder %s43_s18, 2 }
  0x17   : > { %3456 = sst [smem:[#allocation24_spill]] %s2789_s30  ;;  %s50_s20 = sadd.s32 1, %s2785_s29 }
  0x18   : > { %s409_s16 = sadd.s32 1, %s2761_s23  ;;  %p419_p1 = scmp.ne.s32.totalorder %s2761_s23, %s2757_s22 }
  0x19   : > { %s3498_s18 = smov (%p44_p0, %s43_s18), 0  ;;  %s3500_s19 = smov (!%p44_p0, %s46_s19), %s2781_s28 }
  0x1a   : > { %3457 = sst [smem:[#allocation25_spill]] %s3498_s18  ;;  %p420_p2 = scmp.eq.s32.totalorder %s2174_s0, 7 }
  0x1b   : > { %p425_p3 = scmp.ne.s32.totalorder %s2757_s22, %s2753_s21  ;;  %p48_p4 = scmp.ge.s32.totalorder %s3500_s19, 2 }
  0x1c   : > { %p426_p5 = scmp.eq.s32.totalorder %s2175_s17, 7  ;;  %p2970_p6 = por %p420_p2, %p419_p1 }
  0x1d   : > { %p2176_p7 = scmp.ge.s32.totalorder %s2789_s30, 1  ;;  %s3502_s19 = smov (%p48_p4, %s3500_s19), 0 }
  0x1e   : > { %s3458_s15 = scalar_select %p2970_p6, 1, 0 }
  0x1f   : > { %3460 = sst [smem:[#allocation27_spill]] %s3502_s19  ;;  %s3504_s20 = smov (!%p48_p4, %s50_s20), %s2785_s29 }
  0x20   : > { %3459 = sst [smem:[#allocation26_spill]] %s3458_s15  ;;  %s405_s27 = ssub.s32 %s2781_s28, %s3502_s19 }
  0x21   : > { %p2980_p8 = por %p426_p5, %p425_p3  ;;  %p52_p9 = scmp.ge.s32.totalorder %s3504_s20, 2 }
  0x22   : > { %p433_p10 = scmp.lt.s32.totalorder %s2789_s30, 9  ;;  %p2985_p11 = scmp.eq.s32.totalorder %s2174_s0, 0 }
  0x23   : > { %s3461_s14 = scalar_select %p2980_p8, 1, 0 }
  0x24   : > { %s3463_s18 = scalar_select %p2985_p11, 1, 0 }
  0x25   : > { %3462 = sst [smem:[#allocation28_spill]] %s3461_s14  ;;  %s3506_s20 = smov (%p52_p9, %s3504_s20), 0 }
  0x26   : > { %3464 = sst [smem:[#allocation29_spill]] %s3506_s20  ;;  %p2991_p12 = pnand %p2176_p7, %p433_p10 }
  0x27   : > { %s404_s19 = ssub.s32 %s2785_s29, %s3506_s20  ;;  %s2791_s14 = smov [#allocation12]  }
  0x28   : > { %s3465_s17 = scalar_select %p2991_p12, 1, 0 }
  0x29   : > { %s406_s28 = sor.u32 %s405_s27, %s404_s19  ;;  %p2424_p13 = pneg %p2991_p12 }
  0x2a   : > { %p407_p0 = scmp.eq.s32.totalorder %s406_s28, 0  ;;  %s467_s21 = sshll.u32 %s2791_s14, 4  ;;  %s468_s21 = int_to_ptr.vmem [resolvable:$true] %s467_s21 }
  0x2b   : > { %p3001_p1 = pnand %p2985_p11, %p2424_p13  ;;  %s2587_s11 = scalar_lea.hbm %s3413_s6, 512 }
  0x2c   : > { %s3006_s30 = scalar_select %p407_p0, %s2761_s23, %s409_s16  }
  0x2d   : > { %p2588_p2 = scmp.ne.s32.totalorder %s3413_s6, %s2587_s11  ;;  %p3016_p3 = pneg %p3001_p1 }
  0x2e   : > { %3467 = sst [smem:[#allocation30_spill]] %s3006_s30  ;;  %p2594_p7 = scmp.lt.u32.totalorder %s2587_s11, %s3413_s6 }
  0x2f   : > { %p2590_p4 = pnand %p3016_p3, %p2588_p2 }
  0x31   : > { %p2591_p5 = pneg %p2590_p4 }
  0x33   : > { %p2596_p9 = pnand %p2594_p7, %p2591_p5 }
  0x35   : > { %2599 = shalt.err (!%p2596_p9)
}
  0x36   : > { %s2600_s13 = scalar_lea.vmem %s468_s21, 512  ;;  %p2608_p8 = scmp.lt.s32.totalorder %s468_s21, %s468_s21 }
  0x37   : > { %p2601_p10 = scmp.ne.s32.totalorder %s468_s21, %s2600_s13  ;;  %p2609_p6 = scmp.lt.s32.totalorder %s2600_s13, %s2600_s13 }
  0x39   : > { %p2603_p13 = pnand %p2601_p10, %p3016_p3  ;;  %p2610_p11 = por %p2609_p6, %p2608_p8 }
  0x3b   : > { %p2604_p0 = pneg %p2603_p13 }
  0x3d   : > { %p2611_p12 = pnand %p2610_p11, %p2604_p0 }
  0x3f   : > { %2614 = shalt.err (!%p2611_p12)
}
  0x40   : > { %s2792_s15 = smov 128   ;;  %s2793_s19 = smov 8  }
  0x41   : > { %2430 = dma.hbm_to_vmem [thread:$0]  (!%p3001_p1), %s3413_s6, 512, %s468_s21, [#allocation13], %s2792_s15, %s2792_s15, %s2793_s19  }
  0x42   : > { %s2794_s27 = smov [#allocation9]   ;;  %s2795_s16 = smov [#allocation14]  }
  0x43   : > { %s451_s14 = sshll.u32 %s2794_s27, 4  ;;  %s489_s29 = sshll.u32 %s2795_s16, 4  ;;  %s452_s14 = int_to_ptr.vmem [resolvable:$true] %s451_s14  ;;  %s3035_s29 = int_to_ptr.vmem [resolvable:$true] %s489_s29 }
  0x44   : > { %s3469_s4 = sld [smem:[#allocation32_spill]] }
  0x4a   : > { %s2615_s23 = scalar_lea.hbm %s3469_s4, 512 }
  0x4b   : > { %p2616_p6 = scmp.ne.s32.totalorder %s3469_s4, %s2615_s23  ;;  %p2622_p12 = scmp.lt.u32.totalorder %s2615_s23, %s3469_s4 }
  0x4d   : > { %p2618_p8 = pnand %p2616_p6, %p3016_p3 }
  0x4f   : > { %p2619_p11 = pneg %p2618_p8 }
  0x51   : > { %p2624_p2 = pnand %p2622_p12, %p2619_p11 }
  0x53   : > { %2627 = shalt.err (!%p2624_p2)
}
  0x54   : > { %s2628_s20 = scalar_lea.vmem %s452_s14, 512  ;;  %p2636_p9 = scmp.lt.s32.totalorder %s452_s14, %s452_s14 }
  0x55   : > { %p2629_p4 = scmp.ne.s32.totalorder %s452_s14, %s2628_s20  ;;  %p2637_p10 = scmp.lt.s32.totalorder %s2628_s20, %s2628_s20 }
  0x57   : > { %p2631_p5 = pnand %p2629_p4, %p3016_p3  ;;  %p2638_p13 = por %p2637_p10, %p2636_p9 }
  0x59   : > { %p2632_p7 = pneg %p2631_p5 }
  0x5b   : > { %p2639_p0 = pnand %p2638_p13, %p2632_p7 }
  0x5d   : > { %2642 = shalt.err (!%p2639_p0)
}
  0x5e   : > { %2427 = dma.hbm_to_vmem [thread:$0]  (!%p3001_p1), %s3469_s4, 512, %s452_s14, [#allocation10], %s2792_s15, %s2792_s15, %s2793_s19  }
  0x5f   : > { %s2643_s27 = scalar_lea.hbm %s3417_s10, 512 }
  0x60   : > { %p2644_p6 = scmp.ne.s32.totalorder %s3417_s10, %s2643_s27  ;;  %p2650_p12 = scmp.lt.u32.totalorder %s2643_s27, %s3417_s10 }
  0x62   : > { %p2646_p8 = pnand %p2644_p6, %p3016_p3 }
  0x64   : > { %p2647_p11 = pneg %p2646_p8 }
  0x66   : > { %p2652_p2 = pnand %p2650_p12, %p2647_p11 }
  0x68   : > { %2655 = shalt.err (!%p2652_p2)
}
  0x69   : > { %s2656_s14 = scalar_lea.vmem %s3035_s29, 512  ;;  %p2664_p9 = scmp.lt.s32.totalorder %s3035_s29, %s3035_s29 }
  0x6a   : > { %p2657_p4 = scmp.ne.s32.totalorder %s3035_s29, %s2656_s14  ;;  %p2665_p10 = scmp.lt.s32.totalorder %s2656_s14, %s2656_s14 }
  0x6c   : > { %p2659_p5 = pnand %p2657_p4, %p3016_p3  ;;  %p2666_p13 = por %p2665_p10, %p2664_p9 }
  0x6e   : > { %p2660_p7 = pneg %p2659_p5 }
  0x70   : > { %p2667_p0 = pnand %p2666_p13, %p2660_p7 }
  0x72   : > { %2670 = shalt.err (!%p2667_p0)
}
  0x73   : > { %2433 = dma.hbm_to_vmem [thread:$0]  (!%p3001_p1), %s3417_s10, 512, %s3035_s29, [#allocation13], %s2792_s15, %s2792_s15, %s2793_s19  }
  0x74   : > { %p3470_p6 = scmp.ne.s32.totalorder %s3465_s17, 0 }
  0x75   : > { %p3471_p3 = scmp.ne.s32.totalorder (!%p3470_p6), %s3463_s18, 0 }
  0x76   : > { %542 = sbr.rel (%p3470_p6) target bundleno = 3144 (0xc48), region = 84 }
  0x7d   : > { %2740 = dma.done.wait (%p3471_p3), [#allocation10], 512  }
  0x7e   : > { %2742 = vsyncadd (%p3471_p3), [#allocation10], 4294966784 }
  0x7f   : > { %2744 = dma.done.wait (%p3471_p3), [#allocation13], 1024  }
  0x80   : > { %2746 = vsyncadd (%p3471_p3), [#allocation13], 4294966272  ;;  %s3441_s29 = sand.u32 1, %s2757_s22   ;;  %p611_p1 = scmp.lt.s32.totalorder %s2773_s26, 1 }
  0x81   : > { %s3098_s17 = sshll.u32 %s3441_s29, 3  ;;  %p613_p8 = scmp.lt.s32.totalorder %s2769_s25, 1 }
  0x82   : > { %p621_p11 = scmp.lt.s32.totalorder %s2765_s24, 1  ;;  %s2190_s15 = sshll.u32 %s2769_s25, 3 }
  0x83   : > { %s612_s18 = scalar_select %p611_p1, %s2773_s26, 1 }
  0x84   : > { %s614_s0 = scalar_select %p613_p8, %s2769_s25, 1 }
  0x85   : > { %s2186_s28 = sshll.u32 %s612_s18, 1  ;;  %s2191_s9 = sshll.u32 %s2765_s24, 3 }
  0x86   : > { %s616_s19 = sadd.s32 %s2186_s28, %s614_s0  ;;  %s3472_s16 = sld [smem:[#allocation31_spill]] }
  0x87   : > { %s2187_s23 = sshll.u32 %s616_s19, 3  ;;  %s610_s4 = scalar_lea.vmem [#allocation15], %s3098_s17 }
  0x88   : > { %s622_s11 = scalar_select %p621_p11, %s2765_s24, 1 }
  0x89   : > { %p2192_p12 = scmp.ne.s32.totalorder %s2765_s24, 0 }
  0x8a   : > { %s624_s21 = sadd.s32 %s2186_s28, %s622_s11  ;;  %v634_v0 = vld [vmem:[%s3409_s2] sm:$0xff] (!%p2192_p12)  ;;  %v635_v1 = vld [vmem:[%s3409_s2 + $0x8] sm:$0xff] (!%p2192_p12)  ;;  %v636_v2 = vld [vmem:[%s3409_s2 + $0x10] sm:$0xff] (!%p2192_p12)  ;;  %v2796_v3 = vmov (!%p2192_p12), 0.0|0.0   ;;  %vm2797_vm0 = vmmov (!%p2192_p12), 0   ;;  %v2798_v6 = vmov (!%p2192_p12), 0.0  }
  0x8b   : > { %s2189_s14 = sshll.u32 %s624_s21, 3  ;;  %632 = sbr.rel (%p2192_p12) target bundleno = 482 (0x1e2), region = 100  ;;  %2374 = vmatprep.subr.bf16.mxu0 (!%p2192_p12), %v2796_v3  ;;  %v2375_v4 = vpack.c.bf16 (!%p2192_p12), %v635_v1, %v634_v0  ;;  %v637_v5 = vld [vmem:[%s3409_s2 + $0x18] sm:$0xff] (!%p2192_p12)  ;;  %2279 = vmatprep.mubr.msk.f32.mxu0 (!%p2192_p12), %vm2797_vm0, %v2798_v6  ;;  %vm737_vm1 = vcmask (!%p2192_p12), 7168   ;;  %v2799_v7 = vmov (!%p2192_p12), -1e+30  }
  0x8c   : > { %s3109_s13 = scalar_lea.vmem %s3472_s16, %s2187_s23  ;;  %s3115_s29 = scalar_lea.vmem %s3408_s1, %s2189_s14  ;;  %738 = vst.msk [vmem:[#allocation5] sm:$0xff] (!%p2192_p12), %vm737_vm1, %v2799_v7  ;;  %739 = vst.msk [vmem:[#allocation5 + $0x8] sm:$0xff] (!%p2192_p12), %vm737_vm1, %v2799_v7  ;;  %v2378_v8 = vpack.c.bf16 (!%p2192_p12), %v637_v5, %v636_v2  ;;  %vm645_vm2 = vcmask (!%p2192_p12), 261120   ;;  %vm719_vm3 = vcmask (!%p2192_p12), 64512   ;;  %v2193_v10 = vld [vmem:[%s3410_s3] ss:$0 sm:$0xff] (!%p2192_p12) }
  0x8d   : > { %740 = vst.msk [vmem:[#allocation5 + $0x10] sm:$0xff] (!%p2192_p12), %vm737_vm1, %v2799_v7  ;;  %741 = vst.msk [vmem:[#allocation5 + $0x18] sm:$0xff] (!%p2192_p12), %vm737_vm1, %v2799_v7  ;;  %2376 = vmatpush3.bf16.msra.mxu0 (!%p2192_p12), %v2375_v4  ;;  %v633_v9 = vld [vmem:[%s3109_s13] sm:$0xff] (!%p2192_p12)  ;;  %s2800_s14 = smov (!%p2192_p12), 104   ;;  %s2801_s20 = smov (!%p2192_p12), 120  }
  0x8e   : > { %742 = vst.msk [vmem:[#allocation6] sm:$0xff] (!%p2192_p12), %vm737_vm1, %v2798_v6  ;;  %743 = vst.msk [vmem:[#allocation6 + $0x8] sm:$0xff] (!%p2192_p12), %vm737_vm1, %v2798_v6  ;;  %2377 = vmatprep.subr.bf16.mxu0 (!%p2192_p12), %v2796_v3  ;;  %s2802_s8 = smov (!%p2192_p12), 112  }
  0x8f   : > { %744 = vst.msk [vmem:[#allocation6 + $0x10] sm:$0xff] (!%p2192_p12), %vm737_vm1, %v2798_v6  ;;  %745 = vst.msk [vmem:[#allocation6 + $0x18] sm:$0xff] (!%p2192_p12), %vm737_vm1, %v2798_v6 }
  0x90   : > { %746 = vst.msk [vmem:[#allocation7] sm:$0xff] (!%p2192_p12), %vm719_vm3, %v2798_v6  ;;  %747 = vst.msk [vmem:[#allocation7 + $0x8] sm:$0xff] (!%p2192_p12), %vm719_vm3, %v2798_v6 }
  0x91   : > { %2379 = vmatpush3.bf16.msra.mxu0 (!%p2192_p12), %v2378_v8  ;;  %748 = vst.msk [vmem:[#allocation7 + $0x10] sm:$0xff] (!%p2192_p12), %vm719_vm3, %v2798_v6  ;;  %749 = vst.msk [vmem:[#allocation7 + $0x18] sm:$0xff] (!%p2192_p12), %vm719_vm3, %v2798_v6 }
  0x94   : > { %2280 = vmatmul.mubr.msk.f32.vlgmr.msra.gmra.mrb[0].mxu0 %vm645_vm2, %v633_v9 }
 0x167   : > { %v715_v11 = vpop.f32.mrb[0].mxu0 }
 0x168   : > { %v716_v12 = vadd.f32 %v2193_v10, %v715_v11  ;;  %v2281_v13 = vpop.f32.mrb[1].mxu0 }
 0x16a   : > { %720 = vst.msk [vmem:[#allocation2] sm:$0xff] %vm719_vm3, %v716_v12  ;;  %732 = vrot.lane.b32.xlu1 %v716_v12, %s2800_s14  ;;  %722 = vrot.lane.b32.xlu0 %v716_v12, %s2801_s20 }
 0x16e   : > { %727 = vrot.lane.b32.xlu0 %v716_v12, %s2802_s8 }
 0x1dc   : > { %v733_v14 = vpop.permute.xlu1 %732  ;;  %v723_v15 = vpop.permute.xlu0 %722 }
 0x1dd   : > { %736 = vst.msk [vmem:[#allocation2 + $0x18] sm:$0xff] %vm719_vm3, %v733_v14  ;;  %726 = vst.msk [vmem:[#allocation2 + $0x8] sm:$0xff] %vm719_vm3, %v723_v15 }
 0x1e0   : > { %v728_v16 = vpop.permute.xlu0 %727 }
 0x1e1   : > { %731 = vst.msk [vmem:[#allocation2 + $0x10] sm:$0xff] %vm719_vm3, %v728_v16 }
 0x1e2 PF: > { %s750_s18 = sadd.s32 7, %s2190_s15 }
 0x1e3   : > { %p2195_p2 = scmp.gt.s32.totalorder %s2191_s9, %s750_s18 }
 0x1e4   : > { %v756_v17 = vld [vmem:[#allocation9] sm:$0xff] (!%p2195_p2)  ;;  %v757_v18 = vld [vmem:[#allocation9 + $0x8] sm:$0xff] (!%p2195_p2)  ;;  %v758_v19 = vld [vmem:[#allocation9 + $0x10] sm:$0xff] (!%p2195_p2)  ;;  %v2803_v20 = vmov (!%p2195_p2), 0.0|0.0   ;;  %vm2804_vm4 = vmmov (!%p2195_p2), 0   ;;  %v2805_v23 = vmov (!%p2195_p2), 0.0   ;;  %v1198_v41 = vlaneseq (!%p2195_p2) }
 0x1e5   : > { %754 = sbr.rel (%p2195_p2) target bundleno = 1570 (0x622), region = 104  ;;  %2380 = vmatprep.subr.bf16.mxu0 (!%p2195_p2), %v2803_v20  ;;  %v2381_v21 = vpack.c.bf16 (!%p2195_p2), %v757_v18, %v756_v17  ;;  %v759_v22 = vld [vmem:[#allocation9 + $0x18] sm:$0xff] (!%p2195_p2)  ;;  %2290 = vmatprep.mubr.msk.f32.mxu0 (!%p2195_p2), %vm2804_vm4, %v2805_v23  ;;  %vm767_vm5 = vcmask (!%p2195_p2), 261120   ;;  %vm841_vm6 = vcmask (!%p2195_p2), 64512   ;;  %s2807_s30 = smov (!%p2195_p2), 120   ;;  %v879_v36 = vld [vmem:[#allocation2 + $0x8] sm:$0xff] (!%p2195_p2)  ;;  %v1200_v44 = vstv (!%p2195_p2), %s2190_s15 }
 0x1e6   : > { %2293 = vmatprep.subr.mxu1 (!%p2195_p2), %v2805_v23  ;;  %2295 = vmatprep.mubr.msk.f32.mxu1 (!%p2195_p2), %vm2804_vm4, %v2805_v23  ;;  %v2384_v24 = vpack.c.bf16 (!%p2195_p2), %v759_v22, %v758_v19  ;;  %v755_v25 = vld [vmem:[%s3115_s29] sm:$0xff] (!%p2195_p2)  ;;  %s2806_s29 = smov (!%p2195_p2), 104   ;;  %s2808_s23 = smov (!%p2195_p2), 112   ;;  %v881_v40 = vld [vmem:[#allocation2 + $0x18] sm:$0xff] (!%p2195_p2)  ;;  %v1199_v42 = vshrl.u32 (!%p2195_p2), %v1198_v41, 7  ;;  %v1203_v43 = vand.u32 (!%p2195_p2), 127, %v1198_v41  ;;  %v1204_v45 = vstv (!%p2195_p2), %s2191_s9 }
 0x1e7   : > { %2382 = vmatpush3.bf16.msra.mxu0 (!%p2195_p2), %v2381_v21  ;;  %v2196_v26 = vld [vmem:[%s3412_s5] ss:$0 sm:$0xff] (!%p2195_p2)  ;;  %v2809_v53 = vmov (!%p2195_p2), 0   ;;  %vm1299_vm8 = vcmask (!%p2195_p2), 7168   ;;  %v1212_v11 = vld [vmem:[#allocation5 + $0x8] sm:$0xff] (!%p2195_p2)  ;;  %v3214_v14 = vld [vmem:[#allocation5 + $0x10] sm:$0xff] (!%p2195_p2) }
 0x1e8   : > { %2383 = vmatprep.subr.bf16.mxu0 (!%p2195_p2), %v2803_v20  ;;  %v878_v31 = vld [vmem:[#allocation2] sm:$0xff] (!%p2195_p2)  ;;  %v880_v39 = vld [vmem:[#allocation2 + $0x10] sm:$0xff] (!%p2195_p2)  ;;  %v1201_v46 = vadd.s32 (!%p2195_p2), %v1200_v44, %v1199_v42  ;;  %v1205_v47 = vadd.s32 (!%p2195_p2), %v1204_v45, %v1203_v43  ;;  %2555 = vset.pattern.permute.xlu0 (!%p2195_p2), %v2809_v53  ;;  %v3216_v15 = vld [vmem:[#allocation5 + $0x18] sm:$0xff] (!%p2195_p2)  ;;  %s2810_s15 = smov (!%p2195_p2), 96   ;;  %s2811_s9 = smov (!%p2195_p2), 88  }
 0x1e9   : > { %2556 = vset.pattern.permute.xlu1 (!%p2195_p2), %v2809_v53  ;;  %v1211_v5 = vld [vmem:[#allocation5] sm:$0xff] (!%p2195_p2)  ;;  %s2812_s28 = smov (!%p2195_p2), 80   ;;  %s2813_s27 = smov (!%p2195_p2), 72  }
 0x1ea   : > { %vm1206_vm7 = vcmp.gt.s32.totalorder (!%p2195_p2), %v1205_v47, %v1201_v46 }
 0x1eb   : > { %2385 = vmatpush3.bf16.msra.mxu0 (!%p2195_p2), %v2384_v24 }
 0x1ec   : > { %2303 = vmatprep.subr.mxu0 %v2805_v23 }
 0x1ee   : > { %2291 = vmatmul.mubr.msk.f32.vlgmr.msra.gmra.mrb[0].mxu0 %vm767_vm5, %v755_v25 }
 0x1ef   : > { %2305 = vmatprep.mubr.msk.f32.mxu0 %vm2804_vm4, %v2805_v23 }
 0x2c1   : > { %v837_v27 = vpop.f32.mrb[0].mxu0 }
 0x2c2   : > { %v3159_v28 = vadd.f32 %v2196_v26, %v837_v27  ;;  %v2292_v29 = vpop.f32.mrb[1].mxu0 }
 0x2c4   : > { %842 = vst.msk [vmem:[#allocation3] sm:$0xff] %vm841_vm6, %v3159_v28  ;;  %868 = vrot.lane.b32.xlu1 %v3159_v28, %s2806_s29  ;;  %848 = vrot.lane.b32.xlu0 %v3159_v28, %s2807_s30 }
 0x2c8   : > { %858 = vrot.lane.b32.xlu0 %v3159_v28, %s2808_s23 }
 0x2cb   : > { %v882_v30 = vld [vmem:[#allocation3] sm:$0xff] }
 0x2cc   : > { %2294 = vmatpush3.xpose.msk.msra.mxu1 %vm841_vm6, %v882_v30 }
 0x2cd   : > { %2298 = vmatprep.subr.mxu1 %v2805_v23 }
 0x2cf   : > { %2296 = vmatmul.mubr.msk.f32.vlgmr.msra.gmra.mrb[0].mxu1 %vm841_vm6, %v878_v31 }
 0x2d0   : > { %2300 = vmatprep.mubr.msk.f32.mxu1 %vm2804_vm4, %v2805_v23 }
 0x336   : > { %v869_v32 = vpop.permute.xlu1 %868  ;;  %v849_v33 = vpop.permute.xlu0 %848 }
 0x337   : > { %872 = vst.msk [vmem:[#allocation3 + $0x18] sm:$0xff] %vm841_vm6, %v869_v32  ;;  %852 = vst.msk [vmem:[#allocation3 + $0x8] sm:$0xff] %vm841_vm6, %v849_v33 }
 0x33a   : > { %v859_v34 = vpop.permute.xlu0 %858 }
 0x33b   : > { %862 = vst.msk [vmem:[#allocation3 + $0x10] sm:$0xff] %vm841_vm6, %v859_v34 }
 0x33e   : > { %v883_v35 = vld [vmem:[#allocation3 + $0x8] sm:$0xff]  ;;  %v885_v38 = vld [vmem:[#allocation3 + $0x18] sm:$0xff] }
 0x33f   : > { %2299 = vmatpush3.xpose.msk.msra.mxu1 %vm841_vm6, %v883_v35 }
 0x340   : > { %2308 = vmatprep.subr.mxu1 %v2805_v23 }
 0x342   : > { %2301 = vmatmul.mubr.msk.f32.vlgmr.msra.gmra.mrb[2].mxu1 %vm841_vm6, %v879_v36  ;;  %v884_v37 = vld [vmem:[#allocation3 + $0x10] sm:$0xff] }
 0x343   : > { %2304 = vmatpush3.xpose.msk.msra.mxu0 %vm841_vm6, %v884_v37  ;;  %2309 = vmatpush3.xpose.msk.msra.mxu1 %vm841_vm6, %v885_v38 }
 0x344   : > { %2310 = vmatprep.mubr.msk.f32.mxu1 %vm2804_vm4, %v2805_v23  ;;  %2313 = vmatprep.subr.mxu0 %v2805_v23 }
 0x345   : > { %2318 = vmatprep.subr.mxu1 %v2805_v23 }
 0x346   : > { %2306 = vmatmul.mubr.msk.f32.vlgmr.msra.gmra.mrb[2].mxu0 %vm841_vm6, %v880_v39  ;;  %2311 = vmatmul.mubr.msk.f32.vlgmr.msra.gmra.mrb[4].mxu1 %vm841_vm6, %v881_v40 }
 0x347   : > { %2315 = vmatprep.mubr.msk.f32.mxu0 %vm2804_vm4, %v2805_v23  ;;  %2320 = vmatprep.mubr.msk.f32.mxu1 %vm2804_vm4, %v2805_v23 }
 0x3a2   : > { %v962_v48 = vpop.f32.mrb[0].mxu1 }
 0x3a3   : > { %v1194_v49 = vmul.f32 0.35355338, %v962_v48  ;;  %v2297_v50 = vpop.f32.mrb[1].mxu1 }
 0x3a5   : > { %v3194_v51 = vsel %vm1206_vm7, -1e+30, %v1194_v49 }
 0x3a6   : > { %v1215_v52 = vsel %vm841_vm6, %v3194_v51, -inf }
 0x3a7   : > { %1216 = vmax.xlane.f32.xlu1 %v1215_v52 }
 0x415   : > { %v1038_v54 = vpop.f32.mrb[2].mxu1 }
 0x416   : > { %v1195_v55 = vmul.f32 0.35355338, %v1038_v54  ;;  %v2302_v56 = vpop.f32.mrb[3].mxu1 }
 0x418   : > { %v3199_v57 = vsel %vm1206_vm7, -1e+30, %v1195_v55 }
 0x419   : > { %v1114_v58 = vpop.f32.mrb[2].mxu0  ;;  %v1218_v59 = vsel %vm841_vm6, %v3199_v57, -inf  ;;  %v1190_v60 = vpop.f32.mrb[4].mxu1 }
 0x41a   : > { %v1196_v61 = vmul.f32 0.35355338, %v1114_v58  ;;  %1219 = vmax.xlane.f32.xlu0 %v1218_v59  ;;  %v2307_v62 = vpop.f32.mrb[3].mxu0  ;;  %v1197_v63 = vmul.f32 0.35355338, %v1190_v60  ;;  %v2312_v0 = vpop.f32.mrb[5].mxu1 }
 0x41c   : > { %v1209_v1 = vsel %vm1206_vm7, -1e+30, %v1196_v61  ;;  %v3205_v2 = vsel %vm1206_vm7, -1e+30, %v1197_v63  ;;  %v1276_v63 = vld [vmem:[#allocation6 + $0x8] sm:$0xff] }
 0x41d   : > { %v1221_v3 = vsel %vm841_vm6, %v1209_v1, -inf  ;;  %v1224_v4 = vsel %vm841_vm6, %v3205_v2, -inf }
 0x41e   : > { %1222 = vmax.xlane.f32.xlu0 %v1221_v3  ;;  %1225 = vmax.xlane.f32.xlu1 %v1224_v4 }
 0x434   : > { %v1217_v6 = vpop.xlane.xlu1 %1216 }
 0x435   : > { %v1227_v7 = vmax.f32 %v1211_v5, %v1217_v6  ;;  %v1278_v6 = vld [vmem:[#allocation6 + $0x18] sm:$0xff] }
 0x437   : > { %v1231_v8 = vsub.f32 %v1211_v5, %v1227_v7  ;;  %1632 = vst.msk [vmem:[#allocation5] sm:$0xff] %vm1299_vm8, %v1227_v7  ;;  %1245 = vperm.xlu0 %2555, %v1227_v7  }
 0x439   : > { %v1235_v9 = vmul.f32 1.442695, %v1231_v8 }
 0x43b   : > { %2557 = vpow2.f32 %v1235_v9 }
 0x445   : > { %v3211_v10 = vpop.eup %2557 }
 0x446   : > { %1310 = vperm.xlu0 %2555, %v3211_v10  }
 0x4a7   : > { %v1220_v12 = vpop.xlane.xlu0 %1219 }
 0x4a8   : > { %v1228_v13 = vmax.f32 %v1212_v11, %v1220_v12 }
 0x4aa   : > { %1633 = vst.msk [vmem:[#allocation5 + $0x8] sm:$0xff] %vm1299_vm8, %v1228_v13  ;;  %1250 = vperm.xlu1 %2556, %v1228_v13   ;;  %v1232_v22 = vsub.f32 %v1212_v11, %v1228_v13  ;;  %v1304_v11 = vld [vmem:[#allocation7] sm:$0xff]  ;;  %v1305_v13 = vld [vmem:[#allocation7 + $0x8] sm:$0xff] }
 0x4ab   : > { %v1223_v16 = vpop.xlane.xlu0 %1222  ;;  %v1226_v17 = vpop.xlane.xlu1 %1225 }
 0x4ac   : > { %v3220_v18 = vmax.f32 %v3214_v14, %v1223_v16  ;;  %v3223_v19 = vmax.f32 %v3216_v15, %v1226_v17  ;;  %v1237_v24 = vmul.f32 1.442695, %v1232_v22 }
 0x4ae   : > { %v1233_v20 = vsub.f32 %v3214_v14, %v3220_v18  ;;  %1634 = vst.msk [vmem:[#allocation5 + $0x10] sm:$0xff] %vm1299_vm8, %v3220_v18  ;;  %1255 = vperm.xlu1 %2556, %v3220_v18   ;;  %v1234_v21 = vsub.f32 %v3216_v15, %v3223_v19  ;;  %1635 = vst.msk [vmem:[#allocation5 + $0x18] sm:$0xff] %vm1299_vm8, %v3223_v19  ;;  %2559 = vpow2.f32 %v1237_v24  ;;  %v1306_v18 = vld [vmem:[#allocation7 + $0x10] sm:$0xff] }
 0x4b0   : > { %v1239_v52 = vmul.f32 1.442695, %v1233_v20  ;;  %v1241_v53 = vmul.f32 1.442695, %v1234_v21 }
 0x4b2   : > { %1260 = vperm.xlu1 %2556, %v3223_v19  }
 0x4b6   : > { %844 = vrot.lane.b32.xlu1 %v3159_v28, %s2810_s15  ;;  %v1246_v26 = vpop.permute.xlu0 %1245 }
 0x4b7   : > { %v1263_v27 = vsub.f32 %v3194_v51, %v1246_v26 }
 0x4b8   : > { %v3239_v25 = vpop.eup %2559 }
 0x4b9   : > { %v1267_v29 = vmul.f32 1.442695, %v1263_v27  ;;  %v1280_v0 = vmul.f32 %v3239_v25, %v1276_v63 }
 0x4ba   : > { %853 = vrot.lane.b32.xlu1 %v3159_v28, %s2811_s9 }
 0x4bb   : > { %2561 = vpow2.f32 %v1267_v29 }
 0x4be   : > { %863 = vrot.lane.b32.xlu1 %v3159_v28, %s2812_s28 }
 0x4c2   : > { %873 = vrot.lane.b32.xlu1 %v3159_v28, %s2813_s27 }
 0x4c5   : > { %v2562_v30 = vpop.eup %2561  ;;  %v1311_v62 = vpop.permute.xlu0 %1310 }
 0x4c6   : > { %1315 = vperm.xlu1 %2556, %v3239_v25   ;;  %v1283_v31 = vsel %vm841_vm6, %v2562_v30, 0.0  ;;  %v1328_v12 = vmul.f32 %v1311_v62, %v1304_v11  ;;  %v1307_v25 = vld [vmem:[#allocation7 + $0x18] sm:$0xff] }
 0x4ea   : > { %1284 = vadd.xlane.f32.xlu1 %v1283_v31 }
 0x529   : > { %v1251_v32 = vpop.permute.xlu1 %1250 }
 0x52a   : > { %v1264_v33 = vsub.f32 %v3199_v57, %v1251_v32 }
 0x52c   : > { %v1269_v34 = vmul.f32 1.442695, %v1264_v33 }
 0x52d   : > { %v1256_v35 = vpop.permute.xlu1 %1255 }
 0x52e   : > { %2563 = vpow2.f32 %v1269_v34  ;;  %v1265_v28 = vsub.f32 %v1209_v1, %v1256_v35 }
 0x530   : > { %v1271_v36 = vmul.f32 1.442695, %v1265_v28 }
 0x531   : > { %v1261_v37 = vpop.permute.xlu1 %1260 }
 0x532   : > { %2565 = vpow2.f32 %v1271_v36  ;;  %v1266_v38 = vsub.f32 %v3205_v2, %v1261_v37  ;;  %v1277_v2 = vld [vmem:[#allocation6 + $0x10] sm:$0xff] }
 0x534   : > { %v1273_v39 = vmul.f32 1.442695, %v1266_v38 }
 0x535   : > { %v845_v40 = vpop.permute.xlu1 %844 }
 0x536   : > { %2567 = vpow2.f32 %v1273_v39  ;;  %847 = vst.msk [vmem:[#allocation4] sm:$0xff] %vm841_vm6, %v845_v40 }
 0x537   : > { %2569 = vpow2.f32 %v1239_v52 }
 0x538   : > { %v2564_v41 = vpop.eup %2563  ;;  %2571 = vpow2.f32 %v1241_v53 }
 0x539   : > { %v854_v42 = vpop.permute.xlu1 %853  ;;  %v1286_v43 = vsel %vm841_vm6, %v2564_v41, 0.0 }
 0x53a   : > { %857 = vst.msk [vmem:[#allocation4 + $0x8] sm:$0xff] %vm841_vm6, %v854_v42  ;;  %1287 = vadd.xlane.f32.xlu0 %v1286_v43 }
 0x53c   : > { %v2566_v44 = vpop.eup %2565 }
 0x53d   : > { %v864_v45 = vpop.permute.xlu1 %863  ;;  %v1289_v46 = vsel %vm841_vm6, %v2566_v44, 0.0  ;;  %v886_v47 = vld [vmem:[#allocation4] sm:$0xff] }
 0x53e   : > { %867 = vst.msk [vmem:[#allocation4 + $0x10] sm:$0xff] %vm841_vm6, %v864_v45  ;;  %1290 = vadd.xlane.f32.xlu0 %v1289_v46  ;;  %2314 = vmatpush3.msra.mxu0 %v886_v47 }
 0x53f   : > { %2316 = vmatmul.mubr.msk.f32.vlgmr.msra.gmra.mrb[4].mxu0 %vm841_vm6, %v2562_v30  ;;  %2323 = vmatprep.subr.mxu0 %v2805_v23 }
 0x540   : > { %v2568_v48 = vpop.eup %2567  ;;  %2325 = vmatprep.mubr.msk.f32.mxu0 %vm2804_vm4, %v2805_v23 }
 0x541   : > { %v874_v49 = vpop.permute.xlu1 %873  ;;  %v887_v50 = vld [vmem:[#allocation4 + $0x8] sm:$0xff]  ;;  %v1292_v51 = vsel %vm841_vm6, %v2568_v48, 0.0  ;;  %v2570_v56 = vpop.eup %2569 }
 0x542   : > { %877 = vst.msk [vmem:[#allocation4 + $0x18] sm:$0xff] %vm841_vm6, %v874_v49  ;;  %2319 = vmatpush3.msra.mxu1 %v887_v50  ;;  %1293 = vadd.xlane.f32.xlu1 %v1292_v51  ;;  %v2572_v57 = vpop.eup %2571  ;;  %v1281_v4 = vmul.f32 %v2570_v56, %v1277_v2 }
 0x543   : > { %2321 = vmatmul.mubr.msk.f32.vlgmr.msra.gmra.mrb[6].mxu1 %vm841_vm6, %v2564_v41  ;;  %2328 = vmatprep.subr.mxu1 %v2805_v23  ;;  %v1282_v8 = vmul.f32 %v2572_v57, %v1278_v6 }
 0x544   : > { %2330 = vmatprep.mubr.msk.f32.mxu1 %vm2804_vm4, %v2805_v23  ;;  %v1275_v23 = vld [vmem:[#allocation6] sm:$0xff] }
 0x545   : > { %v888_v54 = vld [vmem:[#allocation4 + $0x10] sm:$0xff]  ;;  %v1316_v58 = vpop.permute.xlu1 %1315  ;;  %v1279_v59 = vmul.f32 %v3211_v10, %v1275_v23 }
 0x546   : > { %2324 = vmatpush3.msra.mxu0 %v888_v54  ;;  %v1329_v17 = vmul.f32 %v1316_v58, %v1305_v13 }
 0x547   : > { %2326 = vmatmul.mubr.msk.f32.vlgmr.msra.gmra.mrb[6].mxu0 %vm841_vm6, %v2566_v44 }
 0x549   : > { %v889_v55 = vld [vmem:[#allocation4 + $0x18] sm:$0xff] }
 0x54a   : > { %2329 = vmatpush3.msra.mxu1 %v889_v55 }
 0x54b   : > { %2331 = vmatmul.mubr.msk.f32.vlgmr.msra.gmra.mrb[8].mxu1 %vm841_vm6, %v2568_v48 }
 0x553   : > { %1320 = vperm.xlu1 %2556, %v2570_v56  }
 0x554   : > { %1325 = vperm.xlu0 %2555, %v2572_v57  }
 0x577   : > { %v1285_v60 = vpop.xlane.xlu1 %1284 }
 0x578   : > { %v1295_v61 = vadd.f32 %v1285_v60, %v1279_v59 }
 0x57a   : > { %1300 = vst.msk [vmem:[#allocation6] sm:$0xff] %vm1299_vm8, %v1295_v61 }
 0x5c7   : > { %v1288_v1 = vpop.xlane.xlu0 %1287 }
 0x5c8   : > { %v1296_v3 = vadd.f32 %v1288_v1, %v1280_v0 }
 0x5ca   : > { %1301 = vst.msk [vmem:[#allocation6 + $0x8] sm:$0xff] %vm1299_vm8, %v1296_v3 }
 0x5cb   : > { %v1291_v5 = vpop.xlane.xlu0 %1290 }
 0x5cc   : > { %v1297_v7 = vadd.f32 %v1291_v5, %v1281_v4 }
 0x5ce   : > { %1302 = vst.msk [vmem:[#allocation6 + $0x10] sm:$0xff] %vm1299_vm8, %v1297_v7 }
 0x5cf   : > { %v1294_v9 = vpop.xlane.xlu1 %1293 }
 0x5d0   : > { %v1298_v10 = vadd.f32 %v1294_v9, %v1282_v8 }
 0x5d2   : > { %1303 = vst.msk [vmem:[#allocation6 + $0x18] sm:$0xff] %vm1299_vm8, %v1298_v10 }
 0x5d3   : > { %v1321_v19 = vpop.permute.xlu1 %1320  ;;  %v1326_v26 = vpop.permute.xlu0 %1325 }
 0x5d4   : > { %v1330_v24 = vmul.f32 %v1321_v19, %v1306_v18  ;;  %v1331_v31 = vmul.f32 %v1326_v26, %v1307_v25 }
 0x612   : > { %v1401_v14 = vpop.f32.mrb[4].mxu0 }
 0x613   : > { %v1624_v15 = vadd.f32 %v1401_v14, %v1328_v12  ;;  %v2317_v16 = vpop.f32.mrb[5].mxu0 }
 0x615   : > { %1628 = vst.msk [vmem:[#allocation7] sm:$0xff] %vm841_vm6, %v1624_v15 }
 0x616   : > { %v1474_v20 = vpop.f32.mrb[6].mxu1 }
 0x617   : > { %v1625_v21 = vadd.f32 %v1474_v20, %v1329_v17  ;;  %v2322_v22 = vpop.f32.mrb[7].mxu1 }
 0x619   : > { %1629 = vst.msk [vmem:[#allocation7 + $0x8] sm:$0xff] %vm841_vm6, %v1625_v21 }
 0x61a   : > { %v1547_v27 = vpop.f32.mrb[6].mxu0 }
 0x61b   : > { %v1626_v29 = vadd.f32 %v1547_v27, %v1330_v24  ;;  %v2327_v30 = vpop.f32.mrb[7].mxu0 }
 0x61d   : > { %1630 = vst.msk [vmem:[#allocation7 + $0x10] sm:$0xff] %vm841_vm6, %v1626_v29 }
 0x61e   : > { %v1620_v32 = vpop.f32.mrb[8].mxu1 }
 0x61f   : > { %v1627_v33 = vadd.f32 %v1620_v32, %v1331_v31  ;;  %v2332_v34 = vpop.f32.mrb[9].mxu1 }
 0x621   : > { %1631 = vst.msk [vmem:[#allocation7 + $0x18] sm:$0xff] %vm841_vm6, %v1627_v33 }
 0x622 PF: > { %p2210_p4 = scmp.ne.s32.totalorder %s2765_s24, 1 }
 0x623   : > { %v1652_v35 = vld [vmem:[#allocation6 + $0x8] sm:$0xff] (!%p2210_p4)  ;;  %v1686_v28 = vld [vmem:[#allocation6 + $0x18] sm:$0xff] (!%p2210_p4)  ;;  %v1669_v36 = vld [vmem:[#allocation6 + $0x10] sm:$0xff] (!%p2210_p4)  ;;  %v2814_v37 = vmov (!%p2210_p4), 0   ;;  %v2815_v46 = vmov (!%p2210_p4), 0.0|0.0   ;;  %vm2816_vm9 = vmmov (!%p2210_p4), 0  }
 0x624   : > { %1639 = sbr.rel (%p2210_p4) target bundleno = 3116 (0xc2c), region = 108  ;;  %2573 = vset.pattern.permute.xlu0 (!%p2210_p4), %v2814_v37  ;;  %2574 = vset.pattern.permute.xlu1 (!%p2210_p4), %v2814_v37  ;;  %2575 = vrcp.f32 (!%p2210_p4), %v1652_v35  ;;  %v1640_v38 = vld [vmem:[#allocation6] sm:$0xff] (!%p2210_p4)  ;;  %v1703_v43 = vld [vmem:[#allocation12] sm:$0xff] (!%p2210_p4)  ;;  %v1704_v44 = vld [vmem:[#allocation12 + $0x8] sm:$0xff] (!%p2210_p4)  ;;  %v2817_v50 = vmov (!%p2210_p4), 0.0   ;;  %s2818_s24 = smov (!%p2210_p4), 8  }
 0x625   : > { %2577 = vrcp.f32 (!%p2210_p4), %v1686_v28  ;;  %v2387_v45 = vpack.c.bf16 (!%p2210_p4), %v1704_v44, %v1703_v43  ;;  %2386 = vmatprep.subr.bf16.mxu1 (!%p2210_p4), %v2815_v46  ;;  %v1705_v47 = vld [vmem:[#allocation12 + $0x10] sm:$0xff] (!%p2210_p4)  ;;  %v1706_v48 = vld [vmem:[#allocation12 + $0x18] sm:$0xff] (!%p2210_p4)  ;;  %2398 = vmatprep.subr.bf16.mxu0 (!%p2210_p4), %v2815_v46  ;;  %v1655_v51 = vld [vmem:[#allocation7 + $0x8] sm:$0xff] (!%p2210_p4)  ;;  %vm1649_vm10 = vcmask (!%p2210_p4), 64512   ;;  %s2819_s16 = smov (!%p2210_p4), 16   ;;  %s2820_s11 = smov (!%p2210_p4), 24  }
 0x626   : > { %2579 = vrcp.f32 (!%p2210_p4), %v1669_v36  ;;  %v2390_v49 = vpack.c.bf16 (!%p2210_p4), %v1706_v48, %v1705_v47  ;;  %2341 = vmatprep.mubr.msk.f32.mxu1 (!%p2210_p4), %vm2816_vm9, %v2817_v50  ;;  %2371 = vmatprep.mubr.msk.f32.mxu0 (!%p2210_p4), %vm2816_vm9, %v2817_v50  ;;  %v1672_v56 = vld [vmem:[#allocation7 + $0x10] sm:$0xff] (!%p2210_p4)  ;;  %v1642_v58 = vld [vmem:[#allocation7] sm:$0xff] (!%p2210_p4)  ;;  %vm1666_vm11 = vcmask (!%p2210_p4), 130112   ;;  %vm1683_vm12 = vcmask (!%p2210_p4), 195712   ;;  %v1820_v14 = vld [vmem:[#allocation14] sm:$0xff] (!%p2210_p4)  ;;  %s3474_s14 = sld [smem:[#allocation34_spill]] (!%p2210_p4) }
 0x627   : > { %2581 = vrcp.f32 (!%p2210_p4), %v1640_v38  ;;  %2388 = vmatpush3.bf16.msra.mxu1 (!%p2210_p4), %v2387_v45  ;;  %vm1700_vm13 = vcmask (!%p2210_p4), 261312   ;;  %vm1714_vm14 = vcmask (!%p2210_p4), 261120   ;;  %v2211_v2 = vld [vmem:[%s3414_s7] ss:$0 sm:$0xff] (!%p2210_p4)  ;;  %v1821_v15 = vld [vmem:[#allocation14 + $0x8] sm:$0xff] (!%p2210_p4)  ;;  %v1822_v17 = vld [vmem:[#allocation14 + $0x10] sm:$0xff] (!%p2210_p4) }
 0x628   : > { %2389 = vmatprep.subr.bf16.mxu1 (!%p2210_p4), %v2815_v46  ;;  %v1689_v53 = vld [vmem:[#allocation7 + $0x18] sm:$0xff] (!%p2210_p4)  ;;  %v1788_v4 = vld [vmem:[%s3109_s13] sm:$0xff] (!%p2210_p4)  ;;  %v2393_v16 = vpack.c.bf16 (!%p2210_p4), %v1821_v15, %v1820_v14  ;;  %v1906_v21 = vld [vmem:[%s3419_s12 + $0x8] sm:$0xff] (!%p2210_p4)  ;;  %s3475_s29 = sld [smem:[#allocation35_spill]] (!%p2210_p4)  ;;  %vm1920_vm15 = vcmask (!%p2210_p4), 523264   ;;  %s3476_s15 = sld [smem:[#allocation36_spill]] (!%p2210_p4) }
 0x629   : > { %v1823_v18 = vld [vmem:[#allocation14 + $0x18] sm:$0xff] (!%p2210_p4)  ;;  %v1907_v22 = vld [vmem:[%s3419_s12 + $0x10] sm:$0xff] (!%p2210_p4)  ;;  %v1908_v25 = vld [vmem:[%s3419_s12 + $0x18] sm:$0xff] (!%p2210_p4)  ;;  %s3477_s27 = sld [smem:[#allocation37_spill]] (!%p2210_p4) }
 0x62a   : > { %v2396_v19 = vpack.c.bf16 (!%p2210_p4), %v1823_v18, %v1822_v17  ;;  %v1905_v20 = vld [vmem:[%s3419_s12] sm:$0xff] (!%p2210_p4)  ;;  %v2402_v26 = vpack.c.bf16 (!%p2210_p4), %v1908_v25, %v1907_v22  ;;  %v1910_v29 = vld [vmem:[%s3419_s12 + $0x28] sm:$0xff] (!%p2210_p4) }
 0x62b   : > { %2391 = vmatpush3.bf16.msra.mxu1 %v2390_v49  ;;  %v2399_v24 = vpack.c.bf16 %v1906_v21, %v1905_v20  ;;  %v1909_v27 = vld [vmem:[%s3419_s12 + $0x20] sm:$0xff] }
 0x62c   : > { %2392 = vmatprep.subr.bf16.mxu1 %v2815_v46  ;;  %v2405_v30 = vpack.c.bf16 %v1910_v29, %v1909_v27  ;;  %v2214_v36 = vld [vmem:[%s3474_s14] ss:$0 sm:$0xff] }
 0x62d   : > { %2400 = vmatpush3.bf16.msra.mxu0 %v2399_v24 }
 0x62e   : > { %v2576_v39 = vpop.eup %2575  ;;  %2401 = vmatprep.subr.bf16.mxu0 %v2815_v46  ;;  %v2217_v47 = vld [vmem:[%s3476_s15] ss:$0 sm:$0xff] }
 0x62f   : > { %v2578_v40 = vpop.eup %2577  ;;  %1658 = vperm.xlu0 %2573, %v2576_v39   ;;  %v1911_v39 = vld [vmem:[%s3419_s12 + $0x30] sm:$0xff] }
 0x630   : > { %v2580_v41 = vpop.eup %2579  ;;  %1692 = vperm.xlu1 %2574, %v2578_v40   ;;  %v1912_v40 = vld [vmem:[%s3419_s12 + $0x38] sm:$0xff] }
 0x631   : > { %v2582_v42 = vpop.eup %2581  ;;  %2403 = vmatpush3.bf16.msra.mxu0 %v2402_v26 }
 0x632   : > { %2404 = vmatprep.subr.bf16.mxu0 %v2815_v46 }
 0x633   : > { %1675 = vperm.xlu0 %2573, %v2580_v41   ;;  %v2408_v41 = vpack.c.bf16 %v1912_v40, %v1911_v39 }
 0x634   : > { %1645 = vperm.xlu1 %2574, %v2582_v42   ;;  %v2215_v42 = vld [vmem:[%s3475_s29] ss:$0 sm:$0xff] }
 0x635   : > { %2406 = vmatpush3.bf16.msra.mxu0 %v2405_v30 }
 0x636   : > { %2407 = vmatprep.subr.bf16.mxu0 %v2815_v46 }
 0x639   : > { %2409 = vmatpush3.bf16.msra.mxu0 %v2408_v41 }
 0x6ae   : > { %v1659_v52 = vpop.permute.xlu0 %1658 }
 0x6af   : > { %v1661_v54 = vmul.f32 %v1659_v52, %v1655_v51  ;;  %v1693_v55 = vpop.permute.xlu1 %1692 }
 0x6b0   : > { %v1695_v57 = vmul.f32 %v1693_v55, %v1689_v53 }
 0x6b1   : > { %1663 = vrot.lane.b32.xlu0 %v1661_v54, %s2818_s24 }
 0x6b2   : > { %v1676_v23 = vpop.permute.xlu0 %1675 }
 0x6b3   : > { %v1678_v59 = vmul.f32 %v1676_v23, %v1672_v56  ;;  %v1646_v60 = vpop.permute.xlu1 %1645 }
 0x6b4   : > { %v1648_v61 = vmul.f32 %v1646_v60, %v1642_v58 }
 0x6b5   : > { %1680 = vrot.lane.b32.xlu1 %v1678_v59, %s2819_s16  ;;  %1697 = vrot.lane.b32.xlu0 %v1695_v57, %s2820_s11  ;;  %s3473_s16 = sld [smem:[#allocation33_spill]]  ;;  %s3478_s11 = sld [smem:[#allocation38_spill]] }
 0x6b6   : > { %1650 = vst.msk [vmem:[#allocation8] sm:$0xff] %vm1649_vm10, %v1648_v61  ;;  %v2219_v61 = vld [vmem:[%s3477_s27] ss:$0 sm:$0xff] }
 0x6bb   : > { %v2213_v35 = vld [vmem:[%s3473_s16] ss:$0 sm:$0xff] }
 0x723   : > { %v1664_v62 = vpop.permute.xlu0 %1663 }
 0x724   : > { %1667 = vst.msk [vmem:[#allocation8] sm:$0xff] %vm1666_vm11, %v1664_v62 }
 0x727   : > { %v1681_v63 = vpop.permute.xlu1 %1680  ;;  %v1698_v0 = vpop.permute.xlu0 %1697 }
 0x728   : > { %1684 = vst.msk [vmem:[#allocation8] sm:$0xff] %vm1683_vm12, %v1681_v63  ;;  %v2220_v63 = vld [vmem:[%s3478_s11] ss:$0 sm:$0xff] }
 0x729   : > { %1701 = vst.msk [vmem:[#allocation8] sm:$0xff] %vm1700_vm13, %v1698_v0 }
 0x730   : > { %v1702_v1 = vld [vmem:[#allocation8] sm:$0xff] }
 0x731   : > { %2342 = vmatmul.mubr.msk.f32.vlgmr.msra.gmra.mrb[0].mxu1 %vm1714_vm14, %v1702_v1 }
 0x732   : > { %2352 = vmatprep.mubr.msk.f32.mxu1 %vm2816_vm9, %v2817_v50  ;;  %2394 = vmatpush3.bf16.msra.mxu1 %v2393_v16 }
 0x733   : > { %2395 = vmatprep.subr.bf16.mxu1 %v2815_v46 }
 0x736   : > { %2397 = vmatpush3.bf16.msra.mxu1 %v2396_v19 }
 0x804   : > { %v1784_v3 = vpop.f32.mrb[0].mxu1 }
 0x805   : > { %v1785_v5 = vadd.f32 %v2211_v2, %v1784_v3  ;;  %v2343_v6 = vpop.f32.mrb[1].mxu1 }
 0x807   : > { %v1789_v7 = vadd.f32 %v1788_v4, %v1785_v5 }
 0x809   : > { %v1790_v8 = vsel %vm1714_vm14, %v1789_v7, 0.0 }
 0x80a   : > { %1791 = vadd.xlane.f32.xlu1 %v1790_v8 }
 0x897   : > { %v1792_v9 = vpop.xlane.xlu1 %1791 }
 0x898   : > { %v1794_v10 = vmul.f32 0.03125, %v1792_v9 }
 0x89a   : > { %v1795_v11 = vsub.f32 %v1789_v7, %v1794_v10 }
 0x89c   : > { %v1796_v12 = vmul.f32 %v1795_v11, %v1795_v11 }
 0x89e   : > { %v1797_v13 = vsel %vm1714_vm14, %v1796_v12, 0.0 }
 0x89f   : > { %1798 = vadd.xlane.f32.xlu0 %v1797_v13 }
 0x92c   : > { %v1799_v31 = vpop.xlane.xlu0 %1798 }
 0x92d   : > { %v1800_v32 = vmul.f32 0.03125, %v1799_v31 }
 0x92f   : > { %v1801_v33 = vadd.f32 1e-05, %v1800_v32 }
 0x931   : > { %2583 = vrsqrt.f32 %v1801_v33 }
 0x93b   : > { %v2584_v34 = vpop.eup %2583 }
 0x93c   : > { %v1803_v28 = vmul.f32 %v2584_v34, %v1795_v11 }
 0x93e   : > { %v1811_v37 = vmul.f32 %v2213_v35, %v1803_v28 }
 0x940   : > { %v1819_v38 = vadd.f32 %v2214_v36, %v1811_v37 }
 0x942   : > { %2353 = vmatmul.mubr.msk.f32.vlgmr.msra.gmra.mrb[2].mxu1 %vm1714_vm14, %v1819_v38 }
 0xa15   : > { %v1900_v43 = vpop.f32.mrb[2].mxu1 }
 0xa16   : > { %v1901_v44 = vadd.f32 %v2215_v42, %v1900_v43  ;;  %v2354_v45 = vpop.f32.mrb[3].mxu1 }
 0xa18   : > { %v1904_v46 = vmax.f32 %v1901_v44, 0.0 }
 0xa1a   : > { %2372 = vmatmul.mubr.msk.f32.vlgmr.msra.gmra.mrb[0].mxu0 %vm1920_vm15, %v1904_v46 }
 0xaed   : > { %v1990_v48 = vpop.f32.mrb[0].mxu0 }
 0xaee   : > { %v1991_v49 = vadd.f32 %v2217_v47, %v1990_v48  ;;  %v2373_v50 = vpop.f32.mrb[1].mxu0 }
 0xaf0   : > { %v1994_v51 = vadd.f32 %v1991_v49, %v1819_v38 }
 0xaf2   : > { %v1995_v52 = vsel %vm1714_vm14, %v1994_v51, 0.0 }
 0xaf3   : > { %1996 = vadd.xlane.f32.xlu0 %v1995_v52 }
 0xb80   : > { %v1997_v53 = vpop.xlane.xlu0 %1996 }
 0xb81   : > { %v1998_v54 = vmul.f32 0.03125, %v1997_v53 }
 0xb83   : > { %v1999_v55 = vsub.f32 %v1994_v51, %v1998_v54 }
 0xb85   : > { %v2000_v56 = vmul.f32 %v1999_v55, %v1999_v55 }
 0xb87   : > { %v2001_v57 = vsel %vm1714_vm14, %v2000_v56, 0.0 }
 0xb88   : > { %2002 = vadd.xlane.f32.xlu1 %v2001_v57 }
 0xc15   : > { %v2003_v58 = vpop.xlane.xlu1 %2002 }
 0xc16   : > { %v2004_v23 = vmul.f32 0.03125, %v2003_v58 }
 0xc18   : > { %v2005_v59 = vadd.f32 1e-05, %v2004_v23 }
 0xc1a   : > { %2585 = vrsqrt.f32 %v2005_v59 }
 0xc24   : > { %v2586_v60 = vpop.eup %2585 }
 0xc25   : > { %v2007_v62 = vmul.f32 %v2586_v60, %v1999_v55 }
 0xc27   : > { %v2015_v0 = vmul.f32 %v2219_v61, %v2007_v62 }
 0xc29   : > { %v2023_v1 = vadd.f32 %v2220_v63, %v2015_v0 }
 0xc2b   : > { %2024 = vst.msk [vmem:[%s610_s4] sm:$0xff] %vm1714_vm14, %v2023_v1 }
 0xc2c PF: > { %s3479_s21 = sld [smem:[#allocation26_spill]]  ;;  %s2222_s14 = sshll.u32 %s2773_s26, 1 }
 0xc2d   : > { %s2037_s13 = sadd.s32 %s2769_s25, %s2222_s14  ;;  %s2041_s20 = sshll.u32 %s610_s4, 4  ;;  %s3350_s20 = int_to_ptr.vmem [resolvable:$true] %s2041_s20 }
 0xc2e   : > { %s2223_s8 = sshll.u32 %s2037_s13, 7  ;;  %s3480_s19 = sld [smem:[#allocation39_spill]] }
 0xc2f   : > { %s3481_s30 = sand.u32 1, %s2757_s22   ;;  %s2671_s15 = scalar_lea.vmem %s3350_s20, 128 }
 0xc30   : > { %s2026_s23 = scalar_lea.sflag [#allocation11], %s3481_s30  ;;  %p2672_p5 = scmp.ne.s32.totalorder %s3350_s20, %s2671_s15 }
 0xc31   : > { %s2821_s25 = smov [#allocation15]  }
 0xc32   : > { %p3482_p7 = scmp.ne.s32.totalorder %s3479_s21, 0  ;;  %s2675_s26 = sshll.u32 %s2821_s25, 4  ;;  %s2676_s26 = int_to_ptr.vmem [resolvable:$false] %s2675_s26 }
 0xc33   : > { %s2677_s4 = scalar_lea.vmem %s2676_s26, 256  ;;  %p2678_p13 = scmp.lt.s32.totalorder %s3350_s20, %s2676_s26 }
 0xc34   : > { %s2039_s29 = scalar_lea.hbm %s3480_s19, %s2223_s8  ;;  %p2673_p9 = pnand %p2672_p5, %p3482_p7 }
 0xc35   : > { %p2679_p0 = scmp.lt.s32.totalorder %s2677_s4, %s2671_s15 }
 0xc36   : > { %p2674_p10 = pneg %p2673_p9 }
 0xc37   : > { %p2680_p6 = por %p2679_p0, %p2678_p13 }
 0xc39   : > { %p2681_p3 = pnand %p2680_p6, %p2674_p10 }
 0xc3b   : > { %2684 = shalt.err (!%p2681_p3)
}
 0xc3c   : > { %s2685_s17 = scalar_lea.hbm %s2039_s29, 128  ;;  %s2689_s27 = scalar_lea.hbm %s3480_s19, 512 }
 0xc3d   : > { %p2686_p1 = scmp.ne.s32.totalorder %s2039_s29, %s2685_s17  ;;  %p2690_p12 = scmp.lt.u32.totalorder %s2039_s29, %s3480_s19 }
 0xc3e   : > { %p2691_p2 = scmp.lt.u32.totalorder %s2689_s27, %s2685_s17  ;;  %p2693_p5 = scmp.lt.u32.totalorder %s2685_s17, %s2039_s29 }
 0xc3f   : > { %p2687_p8 = pnand %p2686_p1, %p3482_p7 }
 0xc40   : > { %p2692_p4 = por %p2691_p2, %p2690_p12 }
 0xc41   : > { %p2688_p11 = pneg %p2687_p8 }
 0xc42   : > { %p2694_p9 = por %p2693_p5, %p2692_p4 }
 0xc44   : > { %p2695_p10 = pnand %p2694_p9, %p2688_p11 }
 0xc46   : > { %2698 = shalt.err (!%p2695_p10)
}
 0xc47   : > { %2422 = dma.vmem_to_hbm [thread:$0]  (%p3482_p7), %s3350_s20, 128, %s2039_s29, %s2026_s23  }
 0xc48 PF: > { %s3483_s11 = sld [smem:[#allocation24_spill]]  ;;  %s3484_s14 = sld [smem:[#allocation19_spill]] }
 0xc49   : > { %s3485_s13 = sld [smem:[#allocation28_spill]] }
 0xc4e   : > { %p2444_p13 = scmp.ge.s32.totalorder %s3483_s11, 2  ;;  %s2053_s8 = sand.u32 1, %s3484_s14  }
 0xc4f   : > { %p3486_p0 = scmp.ne.s32.totalorder %s3485_s13, 0  ;;  %s2054_s18 = scalar_lea.sflag [#allocation11], %s2053_s8 }
 0xc51   : > { %p2435_p6 = pnand %p2444_p13, %p3486_p0 }
 0xc53   : > { %2748 = dma.done.wait (!%p2435_p6), %s2054_s18, 128  }
 0xc54   : > { %2750 = vsyncadd (!%p2435_p6), %s2054_s18, 4294967168  ;;  %s31_s30 = sadd.s32 1, %s3483_s11   ;;  %s3487_s0 = sld [smem:[#allocation20_spill]] }
 0xc55   : > { %p28_p3 = scmp.ge.s32.totalorder %s31_s30, 10   ;;  %s3488_s23 = sld [smem:[#allocation30_spill]] }
 0xc56   : > { %s3489_s24 = sld [smem:[#allocation21_spill]]  ;;  %s3490_s25 = sld [smem:[#allocation22_spill]] }
 0xc57   : > { %s3491_s26 = sld [smem:[#allocation23_spill]]  ;;  %s3492_s27 = sld [smem:[#allocation25_spill]] }
 0xc58   : > { %s3493_s28 = sld [smem:[#allocation27_spill]]  ;;  %s3494_s29 = sld [smem:[#allocation29_spill]] }
 0xc59   : > { %s3495_s21 = smov %s2757_s22  ;;  %30 = sbr.rel (!%p28_p3) target bundleno = 18 (0x12), region = 162 }
 0xc5a   : > { %s3496_s22 = smov %s3487_s0 }
 0xc60   :  { %2059 = vsyncpa [#allocation10], 1 }
 0xc61   :  { %2061 = vsyncpa [#allocation10 + $0x1], 1 }
 0xc62   :  { %2062 = vsyncpa [#allocation13], 1 }
 0xc63   :  { %2063 = vsyncpa [#allocation11], 1 }
 0xc64   :  { %2065 = vsyncpa [#allocation11 + $0x1], 1 }

</bundles_post_ra>
